<compile_context>
chip_gen: v7x
topology: tpu7x:2x2x1
jax: 0.10.0
libtpu: 0.0.40
codegen_flags: <defaults>
</compile_context>

<pallas_src>
import jax
import jax.numpy as jnp
from jax.experimental import pallas as pl
from jax.experimental.pallas import tpu as pltpu


def _round_up(x, m):
    return -(-x // m) * m


def _mega_cell_kernel(x_ref,
                      wx_ref, bx_ref,
                      whh_f_ref, bn_f_ref,
                      whh_b_ref, bn_b_ref,
                      wup_f_ref, wup_b_ref, bup_ref,
                      h0_f_ref, h0_b_ref,
                      h_last_ref, h_first_ref, logits_ref,
                      sf_scr, sb_scr, gx_scr):
    S, B, H = sf_scr.shape
    GP2 = gx_scr.shape[-1]     # 2 * padded gate width (both directions packed)
    GP = GP2 // 2
    D = x_ref.shape[-1]

    # ---- time-parallel half: input-side gate pre-activations for all
    # timesteps AND both directions in ONE lane-dense matmul (the `lower`
    # Linear is already folded into wx/bx offline).
    x_flat = x_ref[...].reshape(S * B, D)
    gx_scr[...] = (jnp.dot(x_flat, wx_ref[...],
                           preferred_element_type=jnp.float32)
                   + bx_ref[...]).reshape(S, B, GP2)

    whh_f = whh_f_ref[...]
    whh_b = whh_b_ref[...]
    bn_f = bn_f_ref[...]
    bn_b = bn_b_ref[...]

    def gru_step(gx, h, whh, bn):
        # gx already contains b_ih (+ b_hh for the r/z gates, folded offline).
        # bn carries b_hh only in the n-gate slot (it must be scaled by r).
        gh = jnp.dot(h, whh, preferred_element_type=jnp.float32) + bn
        r = jax.nn.sigmoid(gx[:, 0:H] + gh[:, 0:H])
        z = jax.nn.sigmoid(gx[:, H:2 * H] + gh[:, H:2 * H])
        n = jnp.tanh(gx[:, 2 * H:3 * H] + r * gh[:, 2 * H:3 * H])
        return (1.0 - z) * n + z * h

    # ---- serial recurrence: only h @ W_hh on the critical path; the two
    # directions form independent chains so their MXU/VPU work overlaps.
    def body(t, carry):
        h_f, h_b = carry
        h_f = gru_step(gx_scr[t, :, :GP], h_f, whh_f, bn_f)
        h_b = gru_step(gx_scr[S - 1 - t, :, GP:], h_b, whh_b, bn_b)
        sf_scr[t] = h_f               # states_l2r[t]
        sb_scr[S - 1 - t] = h_b       # states_r2l[S-1-t]
        return h_f, h_b

    h_f, h_b = jax.lax.fori_loop(
        0, S, body, (h0_f_ref[...], h0_b_ref[...]), unroll=True)

    h_last_ref[...] = h_f    # states_l2r[-1]
    h_first_ref[...] = h_b   # states_r2l[0]

    # ---- fused `upper`: concat(h_l2r, h_r2l) @ W_up + b, computed as two
    # batched matmuls over the whole sequence (states never leave VMEM,
    # logits store is unmasked 128-lane wide).
    sf = sf_scr[...].reshape(S * B, H)
    sb = sb_scr[...].reshape(S * B, H)
    logits = (jnp.dot(sf, wup_f_ref[...], preferred_element_type=jnp.float32)
              + jnp.dot(sb, wup_b_ref[...], preferred_element_type=jnp.float32)
              + bup_ref[...])
    logits_ref[...] = logits.reshape(S, B, -1)


def _compose_direction(w_low, b_low, wih, whh, bih, bhh, gp):
    """Fold the `lower` Linear and biases into packed, lane-padded GRU weights."""
    wih_p = jnp.concatenate([wih[0], wih[1], wih[2]], axis=1)   # (I, 3H)
    whh_p = jnp.concatenate([whh[0], whh[1], whh[2]], axis=1)   # (H, 3H)
    bih_p = jnp.concatenate([bih[0], bih[1], bih[2]], axis=1)   # (1, 3H)
    zeros = jnp.zeros_like(bhh[2])

    wx = w_low @ wih_p                                          # (D, 3H)
    # Input-side bias: b_low @ W_ih + b_ih, plus b_hh pre-summed for r/z gates.
    bx = b_low @ wih_p + bih_p + jnp.concatenate([bhh[0], bhh[1], zeros], axis=1)
    # b_hh_n stays on the hidden side (multiplied by r in the GRU update).
    bn = jnp.concatenate([zeros, zeros, bhh[2]], axis=1)

    pad = lambda a: jnp.pad(a, ((0, 0), (0, gp - a.shape[1])))
    return pad(wx), pad(bx), pad(whh_p), pad(bn)


@jax.jit
def mega_cell_forward(x, params, h0_l2r, h0_r2l):
    """MegaCell.forward(direction=0) followed by get_output(argmax=False).

    Returns (states_l2r[-1], states_r2l[0], logits)."""
    S, B, D = x.shape
    H = params['wih_f'].shape[2]
    C = params['wup_f'].shape[1]
    GP = _round_up(3 * H, 128)   # packed gate width (96 -> 128 lanes)
    CP = _round_up(C, 128)       # padded class width -> unmasked logit stores

    wx_f, bx_f, whh_f, bn_f = _compose_direction(
        params['w_low'], params['b_low'], params['wih_f'], params['whh_f'],
        params['bih_f'], params['bhh_f'], GP)
    wx_b, bx_b, whh_b, bn_b = _compose_direction(
        params['w_low'], params['b_low'], params['wih_b'], params['whh_b'],
        params['bih_b'], params['bhh_b'], GP)

    # Pack both directions' input-side weights side by side -> one big matmul.
    wx_cat = jnp.concatenate([wx_f, wx_b], axis=1)   # (D, 2*GP)
    bx_cat = jnp.concatenate([bx_f, bx_b], axis=1)   # (1, 2*GP)

    padc = lambda a: jnp.pad(a, ((0, 0), (0, CP - a.shape[1])))
    wup_f = padc(params['wup_f'])
    wup_b = padc(params['wup_b'])
    b_up = padc(params['b_up'])

    vmem = pl.BlockSpec(memory_space=pltpu.MemorySpace.VMEM)

    h_last, h_first, logits_pad = pl.pallas_call(
        _mega_cell_kernel,
        out_shape=(jax.ShapeDtypeStruct((B, H), jnp.float32),
                   jax.ShapeDtypeStruct((B, H), jnp.float32),
                   jax.ShapeDtypeStruct((S, B, CP), jnp.float32)),
        in_specs=[vmem] * 12,
        out_specs=(vmem, vmem, vmem),
        scratch_shapes=[pltpu.VMEM((S, B, H), jnp.float32),       # states_l2r
                        pltpu.VMEM((S, B, H), jnp.float32),       # states_r2l
                        pltpu.VMEM((S, B, 2 * GP), jnp.float32)], # gx (both dirs)
    )(x,
      wx_cat, bx_cat,
      whh_f, bn_f,
      whh_b, bn_b,
      wup_f, wup_b, b_up,
      h0_l2r, h0_r2l)

    return h_last, h_first, logits_pad[..., :C]


def init_params(key, D, I, H, C):
    ks = jax.random.split(key, 13)

    def u(k, shape, fan_in):
        s = 1.0 / float(fan_in) ** 0.5
        return jax.random.uniform(k, shape, jnp.float32, -s, s)

    return {
        'w_low': u(ks[0], (D, I), D), 'b_low': u(ks[1], (1, I), D),
        'wih_f': u(ks[2], (3, I, H), I), 'whh_f': u(ks[3], (3, H, H), H),
        'bih_f': u(ks[4], (3, 1, H), H), 'bhh_f': u(ks[5], (3, 1, H), H),
        'wih_b': u(ks[6], (3, I, H), I), 'whh_b': u(ks[7], (3, H, H), H),
        'bih_b': u(ks[8], (3, 1, H), H), 'bhh_b': u(ks[9], (3, 1, H), H),
        'wup_f': u(ks[10], (H, C), 2 * H), 'wup_b': u(ks[11], (H, C), 2 * H),
        'b_up': u(ks[12], (1, C), 2 * H),
    }


def reference_forward(x, p, h0_f, h0_b):
    """Pure-JAX mirror of the PyTorch MegaCell forward (direction=0) + get_output."""
    S = x.shape[0]

    def cell(xt, h, wih, whh, bih, bhh):
        gx_r = xt @ wih[0] + bih[0]
        gx_z = xt @ wih[1] + bih[1]
        gx_n = xt @ wih[2] + bih[2]
        gh_r = h @ whh[0] + bhh[0]
        gh_z = h @ whh[1] + bhh[1]
        gh_n = h @ whh[2] + bhh[2]
        r = jax.nn.sigmoid(gx_r + gh_r)
        z = jax.nn.sigmoid(gx_z + gh_z)
        n = jnp.tanh(gx_n + r * gh_n)
        return (1.0 - z) * n + z * h

    xl = jnp.einsum('sbd,di->sbi', x, p['w_low']) + p['b_low'][0]

    h, sf = h0_f, []
    for t in range(S):
        h = cell(xl[t], h, p['wih_f'], p['whh_f'], p['bih_f'], p['bhh_f'])
        sf.append(h)
    h, sb = h0_b, []
    for t in range(S - 1, -1, -1):
        h = cell(xl[t], h, p['wih_b'], p['whh_b'], p['bih_b'], p['bhh_b'])
        sb.append(h)
    sb = sb[::-1]
    sf, sb = jnp.stack(sf), jnp.stack(sb)
    logits = (jnp.einsum('sbh,hc->sbc', sf, p['wup_f'])
              + jnp.einsum('sbh,hc->sbc', sb, p['wup_b']) + p['b_up'][0])
    return sf[-1], sb[0], logits


if __name__ == "__main__":
    S, B, D, I, H, C = 8, 8, 16, 16, 32, 4
    key = jax.random.PRNGKey(0)
    k_x, k_hf, k_hb, k_p = jax.random.split(key, 4)

    x = jax.random.normal(k_x, (S, B, D), jnp.float32)
    h0_f = 0.1 * jax.random.normal(k_hf, (B, H), jnp.float32)
    h0_b = 0.1 * jax.random.normal(k_hb, (B, H), jnp.float32)
    params = init_params(k_p, D, I, H, C)

    h_last_l2r, h_first_r2l, logits = jax.block_until_ready(
        mega_cell_forward(x, params, h0_f, h0_b))

    r_last, r_first, r_logits = reference_forward(x, params, h0_f, h0_b)
    assert jnp.allclose(h_last_l2r, r_last, atol=1e-4, rtol=1e-4)
    assert jnp.allclose(h_first_r2l, r_first, atol=1e-4, rtol=1e-4)
    assert jnp.allclose(logits, r_logits, atol=1e-4, rtol=1e-4)

    print("KERNEL_OK")
</pallas_src>

<mosaic_0001>
module attributes {stable_mosaic.version = 11 : i64} {
  func.func @_mega_cell_kernel(%arg0: memref<8x8x16xf32, #tpu.memory_space<vmem>>, %arg1: memref<16x256xf32, #tpu.memory_space<vmem>>, %arg2: memref<1x256xf32, #tpu.memory_space<vmem>>, %arg3: memref<32x128xf32, #tpu.memory_space<vmem>>, %arg4: memref<1x128xf32, #tpu.memory_space<vmem>>, %arg5: memref<32x128xf32, #tpu.memory_space<vmem>>, %arg6: memref<1x128xf32, #tpu.memory_space<vmem>>, %arg7: memref<32x128xf32, #tpu.memory_space<vmem>>, %arg8: memref<32x128xf32, #tpu.memory_space<vmem>>, %arg9: memref<1x128xf32, #tpu.memory_space<vmem>>, %arg10: memref<8x32xf32, #tpu.memory_space<vmem>>, %arg11: memref<8x32xf32, #tpu.memory_space<vmem>>, %arg12: memref<8x32xf32, #tpu.memory_space<vmem>>, %arg13: memref<8x32xf32, #tpu.memory_space<vmem>>, %arg14: memref<8x8x128xf32, #tpu.memory_space<vmem>>, %arg15: memref<8x8x32xf32, #tpu.memory_space<vmem>>, %arg16: memref<8x8x32xf32, #tpu.memory_space<vmem>>, %arg17: memref<8x8x256xf32, #tpu.memory_space<vmem>>) attributes {dimension_semantics = [], scalar_prefetch = 0 : i64, scratch_operands = 3 : i64, tpu.core_type = #tpu.core_type<tc>} {
    %c0 = arith.constant 0 : index
    %c0_0 = arith.constant 0 : index
    %c0_1 = arith.constant 0 : index
    %0 = vector.load %arg0[%c0, %c0_0, %c0_1] : memref<8x8x16xf32, #tpu.memory_space<vmem>>, vector<8x8x16xf32>
    %1 = vector.shape_cast %0 : vector<8x8x16xf32> to vector<64x16xf32>
    %c0_2 = arith.constant 0 : index
    %c0_3 = arith.constant 0 : index
    %2 = vector.load %arg1[%c0_2, %c0_3] : memref<16x256xf32, #tpu.memory_space<vmem>>, vector<16x256xf32>
    %cst = arith.constant dense<0.000000e+00> : vector<64x256xf32>
    %3 = tpu.matmul %1, %2, %cst {dimension_numbers = #tpu.dot_dimension_numbers<[1], [0], [0], [1], [0, 0, 1, 1], [], []>} : vector<64x16xf32>, vector<16x256xf32>, vector<64x256xf32> -> vector<64x256xf32>
    %c0_4 = arith.constant 0 : index
    %c0_5 = arith.constant 0 : index
    %4 = vector.load %arg2[%c0_4, %c0_5] : memref<1x256xf32, #tpu.memory_space<vmem>>, vector<1x256xf32>
    %5 = vector.broadcast %4 : vector<1x256xf32> to vector<64x256xf32>
    %6 = arith.addf %3, %5 : vector<64x256xf32>
    %7 = vector.shape_cast %6 : vector<64x256xf32> to vector<8x8x256xf32>
    %c0_6 = arith.constant 0 : index
    %c0_7 = arith.constant 0 : index
    %c0_8 = arith.constant 0 : index
    %8 = vector.load %arg17[%c0_6, %c0_7, %c0_8] : memref<8x8x256xf32, #tpu.memory_space<vmem>>, vector<8x8x256xf32>
    tpu.vector_store %arg17[%c0_6, %c0_7, %c0_8], %7 {strides = array<i32>} : memref<8x8x256xf32, #tpu.memory_space<vmem>>, vector<8x8x256xf32>,
    %c0_9 = arith.constant 0 : index
    %c0_10 = arith.constant 0 : index
    %9 = vector.load %arg3[%c0_9, %c0_10] : memref<32x128xf32, #tpu.memory_space<vmem>>, vector<32x128xf32>
    %c0_11 = arith.constant 0 : index
    %c0_12 = arith.constant 0 : index
    %10 = vector.load %arg5[%c0_11, %c0_12] : memref<32x128xf32, #tpu.memory_space<vmem>>, vector<32x128xf32>
    %c0_13 = arith.constant 0 : index
    %c0_14 = arith.constant 0 : index
    %11 = vector.load %arg4[%c0_13, %c0_14] : memref<1x128xf32, #tpu.memory_space<vmem>>, vector<1x128xf32>
    %c0_15 = arith.constant 0 : index
    %c0_16 = arith.constant 0 : index
    %12 = vector.load %arg6[%c0_15, %c0_16] : memref<1x128xf32, #tpu.memory_space<vmem>>, vector<1x128xf32>
    %c0_17 = arith.constant 0 : index
    %c0_18 = arith.constant 0 : index
    %13 = vector.load %arg10[%c0_17, %c0_18] : memref<8x32xf32, #tpu.memory_space<vmem>>, vector<8x32xf32>
    %c0_19 = arith.constant 0 : index
    %c0_20 = arith.constant 0 : index
    %14 = vector.load %arg11[%c0_19, %c0_20] : memref<8x32xf32, #tpu.memory_space<vmem>>, vector<8x32xf32>
    %c0_i32 = arith.constant 0 : i32
    %15 = arith.index_cast %c0_i32 : i32 to index
    %c0_21 = arith.constant 0 : index
    %c0_22 = arith.constant 0 : index
    %16 = vector.load %arg17[%15, %c0_21, %c0_22] : memref<8x8x256xf32, #tpu.memory_space<vmem>>, vector<1x8x128xf32>
    %17 = vector.shape_cast %16 : vector<1x8x128xf32> to vector<8x128xf32>
    %cst_23 = arith.constant dense<0.000000e+00> : vector<8x128xf32>
    %18 = tpu.matmul %13, %9, %cst_23 {dimension_numbers = #tpu.dot_dimension_numbers<[1], [0], [0], [1], [0, 0, 1, 1], [], []>} : vector<8x32xf32>, vector<32x128xf32>, vector<8x128xf32> -> vector<8x128xf32>
    %19 = vector.broadcast %11 : vector<1x128xf32> to vector<8x128xf32>
    %20 = arith.addf %18, %19 : vector<8x128xf32>
    %21 = vector.extract_strided_slice %17 {offsets = [0, 0], sizes = [8, 32], strides = [1, 1]} : vector<8x128xf32> to vector<8x32xf32>
    %22 = vector.extract_strided_slice %20 {offsets = [0, 0], sizes = [8, 32], strides = [1, 1]} : vector<8x128xf32> to vector<8x32xf32>
    %23 = arith.addf %21, %22 : vector<8x32xf32>
    %24 = arith.negf %23 : vector<8x32xf32>
    %25 = math.exp %24 : vector<8x32xf32>
    %cst_24 = arith.constant 1.000000e+00 : f32
    %26 = vector.broadcast %cst_24 : f32 to vector<8x32xf32>
    %27 = arith.addf %26, %25 : vector<8x32xf32>
    %28 = arith.divf %26, %27 : vector<8x32xf32>
    %29 = vector.extract_strided_slice %17 {offsets = [0, 32], sizes = [8, 32], strides = [1, 1]} : vector<8x128xf32> to vector<8x32xf32>
    %30 = vector.extract_strided_slice %20 {offsets = [0, 32], sizes = [8, 32], strides = [1, 1]} : vector<8x128xf32> to vector<8x32xf32>
    %31 = arith.addf %29, %30 : vector<8x32xf32>
    %32 = arith.negf %31 : vector<8x32xf32>
    %33 = math.exp %32 : vector<8x32xf32>
    %cst_25 = arith.constant 1.000000e+00 : f32
    %34 = vector.broadcast %cst_25 : f32 to vector<8x32xf32>
    %35 = arith.addf %34, %33 : vector<8x32xf32>
    %36 = arith.divf %34, %35 : vector<8x32xf32>
    %37 = vector.extract_strided_slice %17 {offsets = [0, 64], sizes = [8, 32], strides = [1, 1]} : vector<8x128xf32> to vector<8x32xf32>
    %38 = vector.extract_strided_slice %20 {offsets = [0, 64], sizes = [8, 32], strides = [1, 1]} : vector<8x128xf32> to vector<8x32xf32>
    %39 = arith.mulf %28, %38 : vector<8x32xf32>
    %40 = arith.addf %37, %39 : vector<8x32xf32>
    %41 = math.tanh %40 : vector<8x32xf32>
    %cst_26 = arith.constant 1.000000e+00 : f32
    %42 = vector.broadcast %cst_26 : f32 to vector<8x32xf32>
    %43 = arith.subf %42, %36 : vector<8x32xf32>
    %44 = arith.mulf %43, %41 : vector<8x32xf32>
    %45 = arith.mulf %36, %13 : vector<8x32xf32>
    %46 = arith.addf %44, %45 : vector<8x32xf32>
    %c7_i32 = arith.constant 7 : i32
    %47 = arith.subi %c7_i32, %c0_i32 : i32
    %48 = arith.index_cast %47 : i32 to index
    %c0_27 = arith.constant 0 : index
    %c128 = arith.constant 128 : index
    %49 = vector.load %arg17[%48, %c0_27, %c128] : memref<8x8x256xf32, #tpu.memory_space<vmem>>, vector<1x8x128xf32>
    %50 = vector.shape_cast %49 : vector<1x8x128xf32> to vector<8x128xf32>
    %cst_28 = arith.constant dense<0.000000e+00> : vector<8x128xf32>
    %51 = tpu.matmul %14, %10, %cst_28 {dimension_numbers = #tpu.dot_dimension_numbers<[1], [0], [0], [1], [0, 0, 1, 1], [], []>} : vector<8x32xf32>, vector<32x128xf32>, vector<8x128xf32> -> vector<8x128xf32>
    %52 = vector.broadcast %12 : vector<1x128xf32> to vector<8x128xf32>
    %53 = arith.addf %51, %52 : vector<8x128xf32>
    %54 = vector.extract_strided_slice %50 {offsets = [0, 0], sizes = [8, 32], strides = [1, 1]} : vector<8x128xf32> to vector<8x32xf32>
    %55 = vector.extract_strided_slice %53 {offsets = [0, 0], sizes = [8, 32], strides = [1, 1]} : vector<8x128xf32> to vector<8x32xf32>
    %56 = arith.addf %54, %55 : vector<8x32xf32>
    %57 = arith.negf %56 : vector<8x32xf32>
    %58 = math.exp %57 : vector<8x32xf32>
    %cst_29 = arith.constant 1.000000e+00 : f32
    %59 = vector.broadcast %cst_29 : f32 to vector<8x32xf32>
    %60 = arith.addf %59, %58 : vector<8x32xf32>
    %61 = arith.divf %59, %60 : vector<8x32xf32>
    %62 = vector.extract_strided_slice %50 {offsets = [0, 32], sizes = [8, 32], strides = [1, 1]} : vector<8x128xf32> to vector<8x32xf32>
    %63 = vector.extract_strided_slice %53 {offsets = [0, 32], sizes = [8, 32], strides = [1, 1]} : vector<8x128xf32> to vector<8x32xf32>
    %64 = arith.addf %62, %63 : vector<8x32xf32>
    %65 = arith.negf %64 : vector<8x32xf32>
    %66 = math.exp %65 : vector<8x32xf32>
    %cst_30 = arith.constant 1.000000e+00 : f32
    %67 = vector.broadcast %cst_30 : f32 to vector<8x32xf32>
    %68 = arith.addf %67, %66 : vector<8x32xf32>
    %69 = arith.divf %67, %68 : vector<8x32xf32>
    %70 = vector.extract_strided_slice %50 {offsets = [0, 64], sizes = [8, 32], strides = [1, 1]} : vector<8x128xf32> to vector<8x32xf32>
    %71 = vector.extract_strided_slice %53 {offsets = [0, 64], sizes = [8, 32], strides = [1, 1]} : vector<8x128xf32> to vector<8x32xf32>
    %72 = arith.mulf %61, %71 : vector<8x32xf32>
    %73 = arith.addf %70, %72 : vector<8x32xf32>
    %74 = math.tanh %73 : vector<8x32xf32>
    %cst_31 = arith.constant 1.000000e+00 : f32
    %75 = vector.broadcast %cst_31 : f32 to vector<8x32xf32>
    %76 = arith.subf %75, %69 : vector<8x32xf32>
    %77 = arith.mulf %76, %74 : vector<8x32xf32>
    %78 = arith.mulf %69, %14 : vector<8x32xf32>
    %79 = arith.addf %77, %78 : vector<8x32xf32>
    %80 = arith.index_cast %c0_i32 : i32 to index
    %c0_32 = arith.constant 0 : index
    %c0_33 = arith.constant 0 : index
    %81 = vector.load %arg15[%80, %c0_32, %c0_33] : memref<8x8x32xf32, #tpu.memory_space<vmem>>, vector<1x8x32xf32>
    %82 = vector.shape_cast %81 : vector<1x8x32xf32> to vector<8x32xf32>
    %83 = vector.shape_cast %46 : vector<8x32xf32> to vector<1x8x32xf32>
    tpu.vector_store %arg15[%80, %c0_32, %c0_33], %83 {strides = array<i32>} : memref<8x8x32xf32, #tpu.memory_space<vmem>>, vector<1x8x32xf32>,
    %c7_i32_34 = arith.constant 7 : i32
    %84 = arith.subi %c7_i32_34, %c0_i32 : i32
    %85 = arith.index_cast %84 : i32 to index
    %c0_35 = arith.constant 0 : index
    %c0_36 = arith.constant 0 : index
    %86 = vector.load %arg16[%85, %c0_35, %c0_36] : memref<8x8x32xf32, #tpu.memory_space<vmem>>, vector<1x8x32xf32>
    %87 = vector.shape_cast %86 : vector<1x8x32xf32> to vector<8x32xf32>
    %88 = vector.shape_cast %79 : vector<8x32xf32> to vector<1x8x32xf32>
    tpu.vector_store %arg16[%85, %c0_35, %c0_36], %88 {strides = array<i32>} : memref<8x8x32xf32, #tpu.memory_space<vmem>>, vector<1x8x32xf32>,
    %c1_i32 = arith.constant 1 : i32
    %89 = arith.index_cast %c1_i32 : i32 to index
    %c0_37 = arith.constant 0 : index
    %c0_38 = arith.constant 0 : index
    %90 = vector.load %arg17[%89, %c0_37, %c0_38] : memref<8x8x256xf32, #tpu.memory_space<vmem>>, vector<1x8x128xf32>
    %91 = vector.shape_cast %90 : vector<1x8x128xf32> to vector<8x128xf32>
    %cst_39 = arith.constant dense<0.000000e+00> : vector<8x128xf32>
    %92 = tpu.matmul %46, %9, %cst_39 {dimension_numbers = #tpu.dot_dimension_numbers<[1], [0], [0], [1], [0, 0, 1, 1], [], []>} : vector<8x32xf32>, vector<32x128xf32>, vector<8x128xf32> -> vector<8x128xf32>
    %93 = vector.broadcast %11 : vector<1x128xf32> to vector<8x128xf32>
    %94 = arith.addf %92, %93 : vector<8x128xf32>
    %95 = vector.extract_strided_slice %91 {offsets = [0, 0], sizes = [8, 32], strides = [1, 1]} : vector<8x128xf32> to vector<8x32xf32>
    %96 = vector.extract_strided_slice %94 {offsets = [0, 0], sizes = [8, 32], strides = [1, 1]} : vector<8x128xf32> to vector<8x32xf32>
    %97 = arith.addf %95, %96 : vector<8x32xf32>
    %98 = arith.negf %97 : vector<8x32xf32>
    %99 = math.exp %98 : vector<8x32xf32>
    %cst_40 = arith.constant 1.000000e+00 : f32
    %100 = vector.broadcast %cst_40 : f32 to vector<8x32xf32>
    %101 = arith.addf %100, %99 : vector<8x32xf32>
    %102 = arith.divf %100, %101 : vector<8x32xf32>
    %103 = vector.extract_strided_slice %91 {offsets = [0, 32], sizes = [8, 32], strides = [1, 1]} : vector<8x128xf32> to vector<8x32xf32>
    %104 = vector.extract_strided_slice %94 {offsets = [0, 32], sizes = [8, 32], strides = [1, 1]} : vector<8x128xf32> to vector<8x32xf32>
    %105 = arith.addf %103, %104 : vector<8x32xf32>
    %106 = arith.negf %105 : vector<8x32xf32>
    %107 = math.exp %106 : vector<8x32xf32>
    %cst_41 = arith.constant 1.000000e+00 : f32
    %108 = vector.broadcast %cst_41 : f32 to vector<8x32xf32>
    %109 = arith.addf %108, %107 : vector<8x32xf32>
    %110 = arith.divf %108, %109 : vector<8x32xf32>
    %111 = vector.extract_strided_slice %91 {offsets = [0, 64], sizes = [8, 32], strides = [1, 1]} : vector<8x128xf32> to vector<8x32xf32>
    %112 = vector.extract_strided_slice %94 {offsets = [0, 64], sizes = [8, 32], strides = [1, 1]} : vector<8x128xf32> to vector<8x32xf32>
    %113 = arith.mulf %102, %112 : vector<8x32xf32>
    %114 = arith.addf %111, %113 : vector<8x32xf32>
    %115 = math.tanh %114 : vector<8x32xf32>
    %cst_42 = arith.constant 1.000000e+00 : f32
    %116 = vector.broadcast %cst_42 : f32 to vector<8x32xf32>
    %117 = arith.subf %116, %110 : vector<8x32xf32>
    %118 = arith.mulf %117, %115 : vector<8x32xf32>
    %119 = arith.mulf %110, %46 : vector<8x32xf32>
    %120 = arith.addf %118, %119 : vector<8x32xf32>
    %c7_i32_43 = arith.constant 7 : i32
    %121 = arith.subi %c7_i32_43, %c1_i32 : i32
    %122 = arith.index_cast %121 : i32 to index
    %c0_44 = arith.constant 0 : index
    %c128_45 = arith.constant 128 : index
    %123 = vector.load %arg17[%122, %c0_44, %c128_45] : memref<8x8x256xf32, #tpu.memory_space<vmem>>, vector<1x8x128xf32>
    %124 = vector.shape_cast %123 : vector<1x8x128xf32> to vector<8x128xf32>
    %cst_46 = arith.constant dense<0.000000e+00> : vector<8x128xf32>
    %125 = tpu.matmul %79, %10, %cst_46 {dimension_numbers = #tpu.dot_dimension_numbers<[1], [0], [0], [1], [0, 0, 1, 1], [], []>} : vector<8x32xf32>, vector<32x128xf32>, vector<8x128xf32> -> vector<8x128xf32>
    %126 = vector.broadcast %12 : vector<1x128xf32> to vector<8x128xf32>
    %127 = arith.addf %125, %126 : vector<8x128xf32>
    %128 = vector.extract_strided_slice %124 {offsets = [0, 0], sizes = [8, 32], strides = [1, 1]} : vector<8x128xf32> to vector<8x32xf32>
    %129 = vector.extract_strided_slice %127 {offsets = [0, 0], sizes = [8, 32], strides = [1, 1]} : vector<8x128xf32> to vector<8x32xf32>
    %130 = arith.addf %128, %129 : vector<8x32xf32>
    %131 = arith.negf %130 : vector<8x32xf32>
    %132 = math.exp %131 : vector<8x32xf32>
    %cst_47 = arith.constant 1.000000e+00 : f32
    %133 = vector.broadcast %cst_47 : f32 to vector<8x32xf32>
    %134 = arith.addf %133, %132 : vector<8x32xf32>
    %135 = arith.divf %133, %134 : vector<8x32xf32>
    %136 = vector.extract_strided_slice %124 {offsets = [0, 32], sizes = [8, 32], strides = [1, 1]} : vector<8x128xf32> to vector<8x32xf32>
    %137 = vector.extract_strided_slice %127 {offsets = [0, 32], sizes = [8, 32], strides = [1, 1]} : vector<8x128xf32> to vector<8x32xf32>
    %138 = arith.addf %136, %137 : vector<8x32xf32>
    %139 = arith.negf %138 : vector<8x32xf32>
    %140 = math.exp %139 : vector<8x32xf32>
    %cst_48 = arith.constant 1.000000e+00 : f32
    %141 = vector.broadcast %cst_48 : f32 to vector<8x32xf32>
    %142 = arith.addf %141, %140 : vector<8x32xf32>
    %143 = arith.divf %141, %142 : vector<8x32xf32>
    %144 = vector.extract_strided_slice %124 {offsets = [0, 64], sizes = [8, 32], strides = [1, 1]} : vector<8x128xf32> to vector<8x32xf32>
    %145 = vector.extract_strided_slice %127 {offsets = [0, 64], sizes = [8, 32], strides = [1, 1]} : vector<8x128xf32> to vector<8x32xf32>
    %146 = arith.mulf %135, %145 : vector<8x32xf32>
    %147 = arith.addf %144, %146 : vector<8x32xf32>
    %148 = math.tanh %147 : vector<8x32xf32>
    %cst_49 = arith.constant 1.000000e+00 : f32
    %149 = vector.broadcast %cst_49 : f32 to vector<8x32xf32>
    %150 = arith.subf %149, %143 : vector<8x32xf32>
    %151 = arith.mulf %150, %148 : vector<8x32xf32>
    %152 = arith.mulf %143, %79 : vector<8x32xf32>
    %153 = arith.addf %151, %152 : vector<8x32xf32>
    %154 = arith.index_cast %c1_i32 : i32 to index
    %c0_50 = arith.constant 0 : index
    %c0_51 = arith.constant 0 : index
    %155 = vector.load %arg15[%154, %c0_50, %c0_51] : memref<8x8x32xf32, #tpu.memory_space<vmem>>, vector<1x8x32xf32>
    %156 = vector.shape_cast %155 : vector<1x8x32xf32> to vector<8x32xf32>
    %157 = vector.shape_cast %120 : vector<8x32xf32> to vector<1x8x32xf32>
    tpu.vector_store %arg15[%154, %c0_50, %c0_51], %157 {strides = array<i32>} : memref<8x8x32xf32, #tpu.memory_space<vmem>>, vector<1x8x32xf32>,
    %c7_i32_52 = arith.constant 7 : i32
    %158 = arith.subi %c7_i32_52, %c1_i32 : i32
    %159 = arith.index_cast %158 : i32 to index
    %c0_53 = arith.constant 0 : index
    %c0_54 = arith.constant 0 : index
    %160 = vector.load %arg16[%159, %c0_53, %c0_54] : memref<8x8x32xf32, #tpu.memory_space<vmem>>, vector<1x8x32xf32>
    %161 = vector.shape_cast %160 : vector<1x8x32xf32> to vector<8x32xf32>
    %162 = vector.shape_cast %153 : vector<8x32xf32> to vector<1x8x32xf32>
    tpu.vector_store %arg16[%159, %c0_53, %c0_54], %162 {strides = array<i32>} : memref<8x8x32xf32, #tpu.memory_space<vmem>>, vector<1x8x32xf32>,
    %c2_i32 = arith.constant 2 : i32
    %163 = arith.index_cast %c2_i32 : i32 to index
    %c0_55 = arith.constant 0 : index
    %c0_56 = arith.constant 0 : index
    %164 = vector.load %arg17[%163, %c0_55, %c0_56] : memref<8x8x256xf32, #tpu.memory_space<vmem>>, vector<1x8x128xf32>
    %165 = vector.shape_cast %164 : vector<1x8x128xf32> to vector<8x128xf32>
    %cst_57 = arith.constant dense<0.000000e+00> : vector<8x128xf32>
    %166 = tpu.matmul %120, %9, %cst_57 {dimension_numbers = #tpu.dot_dimension_numbers<[1], [0], [0], [1], [0, 0, 1, 1], [], []>} : vector<8x32xf32>, vector<32x128xf32>, vector<8x128xf32> -> vector<8x128xf32>
    %167 = vector.broadcast %11 : vector<1x128xf32> to vector<8x128xf32>
    %168 = arith.addf %166, %167 : vector<8x128xf32>
    %169 = vector.extract_strided_slice %165 {offsets = [0, 0], sizes = [8, 32], strides = [1, 1]} : vector<8x128xf32> to vector<8x32xf32>
    %170 = vector.extract_strided_slice %168 {offsets = [0, 0], sizes = [8, 32], strides = [1, 1]} : vector<8x128xf32> to vector<8x32xf32>
    %171 = arith.addf %169, %170 : vector<8x32xf32>
    %172 = arith.negf %171 : vector<8x32xf32>
    %173 = math.exp %172 : vector<8x32xf32>
    %cst_58 = arith.constant 1.000000e+00 : f32
    %174 = vector.broadcast %cst_58 : f32 to vector<8x32xf32>
    %175 = arith.addf %174, %173 : vector<8x32xf32>
    %176 = arith.divf %174, %175 : vector<8x32xf32>
    %177 = vector.extract_strided_slice %165 {offsets = [0, 32], sizes = [8, 32], strides = [1, 1]} : vector<8x128xf32> to vector<8x32xf32>
    %178 = vector.extract_strided_slice %168 {offsets = [0, 32], sizes = [8, 32], strides = [1, 1]} : vector<8x128xf32> to vector<8x32xf32>
    %179 = arith.addf %177, %178 : vector<8x32xf32>
    %180 = arith.negf %179 : vector<8x32xf32>
    %181 = math.exp %180 : vector<8x32xf32>
    %cst_59 = arith.constant 1.000000e+00 : f32
    %182 = vector.broadcast %cst_59 : f32 to vector<8x32xf32>
    %183 = arith.addf %182, %181 : vector<8x32xf32>
    %184 = arith.divf %182, %183 : vector<8x32xf32>
    %185 = vector.extract_strided_slice %165 {offsets = [0, 64], sizes = [8, 32], strides = [1, 1]} : vector<8x128xf32> to vector<8x32xf32>
    %186 = vector.extract_strided_slice %168 {offsets = [0, 64], sizes = [8, 32], strides = [1, 1]} : vector<8x128xf32> to vector<8x32xf32>
    %187 = arith.mulf %176, %186 : vector<8x32xf32>
    %188 = arith.addf %185, %187 : vector<8x32xf32>
    %189 = math.tanh %188 : vector<8x32xf32>
    %cst_60 = arith.constant 1.000000e+00 : f32
    %190 = vector.broadcast %cst_60 : f32 to vector<8x32xf32>
    %191 = arith.subf %190, %184 : vector<8x32xf32>
    %192 = arith.mulf %191, %189 : vector<8x32xf32>
    %193 = arith.mulf %184, %120 : vector<8x32xf32>
    %194 = arith.addf %192, %193 : vector<8x32xf32>
    %c7_i32_61 = arith.constant 7 : i32
    %195 = arith.subi %c7_i32_61, %c2_i32 : i32
    %196 = arith.index_cast %195 : i32 to index
    %c0_62 = arith.constant 0 : index
    %c128_63 = arith.constant 128 : index
    %197 = vector.load %arg17[%196, %c0_62, %c128_63] : memref<8x8x256xf32, #tpu.memory_space<vmem>>, vector<1x8x128xf32>
    %198 = vector.shape_cast %197 : vector<1x8x128xf32> to vector<8x128xf32>
    %cst_64 = arith.constant dense<0.000000e+00> : vector<8x128xf32>
    %199 = tpu.matmul %153, %10, %cst_64 {dimension_numbers = #tpu.dot_dimension_numbers<[1], [0], [0], [1], [0, 0, 1, 1], [], []>} : vector<8x32xf32>, vector<32x128xf32>, vector<8x128xf32> -> vector<8x128xf32>
    %200 = vector.broadcast %12 : vector<1x128xf32> to vector<8x128xf32>
    %201 = arith.addf %199, %200 : vector<8x128xf32>
    %202 = vector.extract_strided_slice %198 {offsets = [0, 0], sizes = [8, 32], strides = [1, 1]} : vector<8x128xf32> to vector<8x32xf32>
    %203 = vector.extract_strided_slice %201 {offsets = [0, 0], sizes = [8, 32], strides = [1, 1]} : vector<8x128xf32> to vector<8x32xf32>
    %204 = arith.addf %202, %203 : vector<8x32xf32>
    %205 = arith.negf %204 : vector<8x32xf32>
    %206 = math.exp %205 : vector<8x32xf32>
    %cst_65 = arith.constant 1.000000e+00 : f32
    %207 = vector.broadcast %cst_65 : f32 to vector<8x32xf32>
    %208 = arith.addf %207, %206 : vector<8x32xf32>
    %209 = arith.divf %207, %208 : vector<8x32xf32>
    %210 = vector.extract_strided_slice %198 {offsets = [0, 32], sizes = [8, 32], strides = [1, 1]} : vector<8x128xf32> to vector<8x32xf32>
    %211 = vector.extract_strided_slice %201 {offsets = [0, 32], sizes = [8, 32], strides = [1, 1]} : vector<8x128xf32> to vector<8x32xf32>
    %212 = arith.addf %210, %211 : vector<8x32xf32>
    %213 = arith.negf %212 : vector<8x32xf32>
    %214 = math.exp %213 : vector<8x32xf32>
    %cst_66 = arith.constant 1.000000e+00 : f32
    %215 = vector.broadcast %cst_66 : f32 to vector<8x32xf32>
    %216 = arith.addf %215, %214 : vector<8x32xf32>
    %217 = arith.divf %215, %216 : vector<8x32xf32>
    %218 = vector.extract_strided_slice %198 {offsets = [0, 64], sizes = [8, 32], strides = [1, 1]} : vector<8x128xf32> to vector<8x32xf32>
    %219 = vector.extract_strided_slice %201 {offsets = [0, 64], sizes = [8, 32], strides = [1, 1]} : vector<8x128xf32> to vector<8x32xf32>
    %220 = arith.mulf %209, %219 : vector<8x32xf32>
    %221 = arith.addf %218, %220 : vector<8x32xf32>
    %222 = math.tanh %221 : vector<8x32xf32>
    %cst_67 = arith.constant 1.000000e+00 : f32
    %223 = vector.broadcast %cst_67 : f32 to vector<8x32xf32>
    %224 = arith.subf %223, %217 : vector<8x32xf32>
    %225 = arith.mulf %224, %222 : vector<8x32xf32>
    %226 = arith.mulf %217, %153 : vector<8x32xf32>
    %227 = arith.addf %225, %226 : vector<8x32xf32>
    %228 = arith.index_cast %c2_i32 : i32 to index
    %c0_68 = arith.constant 0 : index
    %c0_69 = arith.constant 0 : index
    %229 = vector.load %arg15[%228, %c0_68, %c0_69] : memref<8x8x32xf32, #tpu.memory_space<vmem>>, vector<1x8x32xf32>
    %230 = vector.shape_cast %229 : vector<1x8x32xf32> to vector<8x32xf32>
    %231 = vector.shape_cast %194 : vector<8x32xf32> to vector<1x8x32xf32>
    tpu.vector_store %arg15[%228, %c0_68, %c0_69], %231 {strides = array<i32>} : memref<8x8x32xf32, #tpu.memory_space<vmem>>, vector<1x8x32xf32>,
    %c7_i32_70 = arith.constant 7 : i32
    %232 = arith.subi %c7_i32_70, %c2_i32 : i32
    %233 = arith.index_cast %232 : i32 to index
    %c0_71 = arith.constant 0 : index
    %c0_72 = arith.constant 0 : index
    %234 = vector.load %arg16[%233, %c0_71, %c0_72] : memref<8x8x32xf32, #tpu.memory_space<vmem>>, vector<1x8x32xf32>
    %235 = vector.shape_cast %234 : vector<1x8x32xf32> to vector<8x32xf32>
    %236 = vector.shape_cast %227 : vector<8x32xf32> to vector<1x8x32xf32>
    tpu.vector_store %arg16[%233, %c0_71, %c0_72], %236 {strides = array<i32>} : memref<8x8x32xf32, #tpu.memory_space<vmem>>, vector<1x8x32xf32>,
    %c3_i32 = arith.constant 3 : i32
    %237 = arith.index_cast %c3_i32 : i32 to index
    %c0_73 = arith.constant 0 : index
    %c0_74 = arith.constant 0 : index
    %238 = vector.load %arg17[%237, %c0_73, %c0_74] : memref<8x8x256xf32, #tpu.memory_space<vmem>>, vector<1x8x128xf32>
    %239 = vector.shape_cast %238 : vector<1x8x128xf32> to vector<8x128xf32>
    %cst_75 = arith.constant dense<0.000000e+00> : vector<8x128xf32>
    %240 = tpu.matmul %194, %9, %cst_75 {dimension_numbers = #tpu.dot_dimension_numbers<[1], [0], [0], [1], [0, 0, 1, 1], [], []>} : vector<8x32xf32>, vector<32x128xf32>, vector<8x128xf32> -> vector<8x128xf32>
    %241 = vector.broadcast %11 : vector<1x128xf32> to vector<8x128xf32>
    %242 = arith.addf %240, %241 : vector<8x128xf32>
    %243 = vector.extract_strided_slice %239 {offsets = [0, 0], sizes = [8, 32], strides = [1, 1]} : vector<8x128xf32> to vector<8x32xf32>
    %244 = vector.extract_strided_slice %242 {offsets = [0, 0], sizes = [8, 32], strides = [1, 1]} : vector<8x128xf32> to vector<8x32xf32>
    %245 = arith.addf %243, %244 : vector<8x32xf32>
    %246 = arith.negf %245 : vector<8x32xf32>
    %247 = math.exp %246 : vector<8x32xf32>
    %cst_76 = arith.constant 1.000000e+00 : f32
    %248 = vector.broadcast %cst_76 : f32 to vector<8x32xf32>
    %249 = arith.addf %248, %247 : vector<8x32xf32>
    %250 = arith.divf %248, %249 : vector<8x32xf32>
    %251 = vector.extract_strided_slice %239 {offsets = [0, 32], sizes = [8, 32], strides = [1, 1]} : vector<8x128xf32> to vector<8x32xf32>
    %252 = vector.extract_strided_slice %242 {offsets = [0, 32], sizes = [8, 32], strides = [1, 1]} : vector<8x128xf32> to vector<8x32xf32>
    %253 = arith.addf %251, %252 : vector<8x32xf32>
    %254 = arith.negf %253 : vector<8x32xf32>
    %255 = math.exp %254 : vector<8x32xf32>
    %cst_77 = arith.constant 1.000000e+00 : f32
    %256 = vector.broadcast %cst_77 : f32 to vector<8x32xf32>
    %257 = arith.addf %256, %255 : vector<8x32xf32>
    %258 = arith.divf %256, %257 : vector<8x32xf32>
    %259 = vector.extract_strided_slice %239 {offsets = [0, 64], sizes = [8, 32], strides = [1, 1]} : vector<8x128xf32> to vector<8x32xf32>
    %260 = vector.extract_strided_slice %242 {offsets = [0, 64], sizes = [8, 32], strides = [1, 1]} : vector<8x128xf32> to vector<8x32xf32>
    %261 = arith.mulf %250, %260 : vector<8x32xf32>
    %262 = arith.addf %259, %261 : vector<8x32xf32>
    %263 = math.tanh %262 : vector<8x32xf32>
    %cst_78 = arith.constant 1.000000e+00 : f32
    %264 = vector.broadcast %cst_78 : f32 to vector<8x32xf32>
    %265 = arith.subf %264, %258 : vector<8x32xf32>
    %266 = arith.mulf %265, %263 : vector<8x32xf32>
    %267 = arith.mulf %258, %194 : vector<8x32xf32>
    %268 = arith.addf %266, %267 : vector<8x32xf32>
    %c7_i32_79 = arith.constant 7 : i32
    %269 = arith.subi %c7_i32_79, %c3_i32 : i32
    %270 = arith.index_cast %269 : i32 to index
    %c0_80 = arith.constant 0 : index
    %c128_81 = arith.constant 128 : index
    %271 = vector.load %arg17[%270, %c0_80, %c128_81] : memref<8x8x256xf32, #tpu.memory_space<vmem>>, vector<1x8x128xf32>
    %272 = vector.shape_cast %271 : vector<1x8x128xf32> to vector<8x128xf32>
    %cst_82 = arith.constant dense<0.000000e+00> : vector<8x128xf32>
    %273 = tpu.matmul %227, %10, %cst_82 {dimension_numbers = #tpu.dot_dimension_numbers<[1], [0], [0], [1], [0, 0, 1, 1], [], []>} : vector<8x32xf32>, vector<32x128xf32>, vector<8x128xf32> -> vector<8x128xf32>
    %274 = vector.broadcast %12 : vector<1x128xf32> to vector<8x128xf32>
    %275 = arith.addf %273, %274 : vector<8x128xf32>
    %276 = vector.extract_strided_slice %272 {offsets = [0, 0], sizes = [8, 32], strides = [1, 1]} : vector<8x128xf32> to vector<8x32xf32>
    %277 = vector.extract_strided_slice %275 {offsets = [0, 0], sizes = [8, 32], strides = [1, 1]} : vector<8x128xf32> to vector<8x32xf32>
    %278 = arith.addf %276, %277 : vector<8x32xf32>
    %279 = arith.negf %278 : vector<8x32xf32>
    %280 = math.exp %279 : vector<8x32xf32>
    %cst_83 = arith.constant 1.000000e+00 : f32
    %281 = vector.broadcast %cst_83 : f32 to vector<8x32xf32>
    %282 = arith.addf %281, %280 : vector<8x32xf32>
    %283 = arith.divf %281, %282 : vector<8x32xf32>
    %284 = vector.extract_strided_slice %272 {offsets = [0, 32], sizes = [8, 32], strides = [1, 1]} : vector<8x128xf32> to vector<8x32xf32>
    %285 = vector.extract_strided_slice %275 {offsets = [0, 32], sizes = [8, 32], strides = [1, 1]} : vector<8x128xf32> to vector<8x32xf32>
    %286 = arith.addf %284, %285 : vector<8x32xf32>
    %287 = arith.negf %286 : vector<8x32xf32>
    %288 = math.exp %287 : vector<8x32xf32>
    %cst_84 = arith.constant 1.000000e+00 : f32
    %289 = vector.broadcast %cst_84 : f32 to vector<8x32xf32>
    %290 = arith.addf %289, %288 : vector<8x32xf32>
    %291 = arith.divf %289, %290 : vector<8x32xf32>
    %292 = vector.extract_strided_slice %272 {offsets = [0, 64], sizes = [8, 32], strides = [1, 1]} : vector<8x128xf32> to vector<8x32xf32>
    %293 = vector.extract_strided_slice %275 {offsets = [0, 64], sizes = [8, 32], strides = [1, 1]} : vector<8x128xf32> to vector<8x32xf32>
    %294 = arith.mulf %283, %293 : vector<8x32xf32>
    %295 = arith.addf %292, %294 : vector<8x32xf32>
    %296 = math.tanh %295 : vector<8x32xf32>
    %cst_85 = arith.constant 1.000000e+00 : f32
    %297 = vector.broadcast %cst_85 : f32 to vector<8x32xf32>
    %298 = arith.subf %297, %291 : vector<8x32xf32>
    %299 = arith.mulf %298, %296 : vector<8x32xf32>
    %300 = arith.mulf %291, %227 : vector<8x32xf32>
    %301 = arith.addf %299, %300 : vector<8x32xf32>
    %302 = arith.index_cast %c3_i32 : i32 to index
    %c0_86 = arith.constant 0 : index
    %c0_87 = arith.constant 0 : index
    %303 = vector.load %arg15[%302, %c0_86, %c0_87] : memref<8x8x32xf32, #tpu.memory_space<vmem>>, vector<1x8x32xf32>
    %304 = vector.shape_cast %303 : vector<1x8x32xf32> to vector<8x32xf32>
    %305 = vector.shape_cast %268 : vector<8x32xf32> to vector<1x8x32xf32>
    tpu.vector_store %arg15[%302, %c0_86, %c0_87], %305 {strides = array<i32>} : memref<8x8x32xf32, #tpu.memory_space<vmem>>, vector<1x8x32xf32>,
    %c7_i32_88 = arith.constant 7 : i32
    %306 = arith.subi %c7_i32_88, %c3_i32 : i32
    %307 = arith.index_cast %306 : i32 to index
    %c0_89 = arith.constant 0 : index
    %c0_90 = arith.constant 0 : index
    %308 = vector.load %arg16[%307, %c0_89, %c0_90] : memref<8x8x32xf32, #tpu.memory_space<vmem>>, vector<1x8x32xf32>
    %309 = vector.shape_cast %308 : vector<1x8x32xf32> to vector<8x32xf32>
    %310 = vector.shape_cast %301 : vector<8x32xf32> to vector<1x8x32xf32>
    tpu.vector_store %arg16[%307, %c0_89, %c0_90], %310 {strides = array<i32>} : memref<8x8x32xf32, #tpu.memory_space<vmem>>, vector<1x8x32xf32>,
    %c4_i32 = arith.constant 4 : i32
    %311 = arith.index_cast %c4_i32 : i32 to index
    %c0_91 = arith.constant 0 : index
    %c0_92 = arith.constant 0 : index
    %312 = vector.load %arg17[%311, %c0_91, %c0_92] : memref<8x8x256xf32, #tpu.memory_space<vmem>>, vector<1x8x128xf32>
    %313 = vector.shape_cast %312 : vector<1x8x128xf32> to vector<8x128xf32>
    %cst_93 = arith.constant dense<0.000000e+00> : vector<8x128xf32>
    %314 = tpu.matmul %268, %9, %cst_93 {dimension_numbers = #tpu.dot_dimension_numbers<[1], [0], [0], [1], [0, 0, 1, 1], [], []>} : vector<8x32xf32>, vector<32x128xf32>, vector<8x128xf32> -> vector<8x128xf32>
    %315 = vector.broadcast %11 : vector<1x128xf32> to vector<8x128xf32>
    %316 = arith.addf %314, %315 : vector<8x128xf32>
    %317 = vector.extract_strided_slice %313 {offsets = [0, 0], sizes = [8, 32], strides = [1, 1]} : vector<8x128xf32> to vector<8x32xf32>
    %318 = vector.extract_strided_slice %316 {offsets = [0, 0], sizes = [8, 32], strides = [1, 1]} : vector<8x128xf32> to vector<8x32xf32>
    %319 = arith.addf %317, %318 : vector<8x32xf32>
    %320 = arith.negf %319 : vector<8x32xf32>
    %321 = math.exp %320 : vector<8x32xf32>
    %cst_94 = arith.constant 1.000000e+00 : f32
    %322 = vector.broadcast %cst_94 : f32 to vector<8x32xf32>
    %323 = arith.addf %322, %321 : vector<8x32xf32>
    %324 = arith.divf %322, %323 : vector<8x32xf32>
    %325 = vector.extract_strided_slice %313 {offsets = [0, 32], sizes = [8, 32], strides = [1, 1]} : vector<8x128xf32> to vector<8x32xf32>
    %326 = vector.extract_strided_slice %316 {offsets = [0, 32], sizes = [8, 32], strides = [1, 1]} : vector<8x128xf32> to vector<8x32xf32>
    %327 = arith.addf %325, %326 : vector<8x32xf32>
    %328 = arith.negf %327 : vector<8x32xf32>
    %329 = math.exp %328 : vector<8x32xf32>
    %cst_95 = arith.constant 1.000000e+00 : f32
    %330 = vector.broadcast %cst_95 : f32 to vector<8x32xf32>
    %331 = arith.addf %330, %329 : vector<8x32xf32>
    %332 = arith.divf %330, %331 : vector<8x32xf32>
    %333 = vector.extract_strided_slice %313 {offsets = [0, 64], sizes = [8, 32], strides = [1, 1]} : vector<8x128xf32> to vector<8x32xf32>
    %334 = vector.extract_strided_slice %316 {offsets = [0, 64], sizes = [8, 32], strides = [1, 1]} : vector<8x128xf32> to vector<8x32xf32>
    %335 = arith.mulf %324, %334 : vector<8x32xf32>
    %336 = arith.addf %333, %335 : vector<8x32xf32>
    %337 = math.tanh %336 : vector<8x32xf32>
    %cst_96 = arith.constant 1.000000e+00 : f32
    %338 = vector.broadcast %cst_96 : f32 to vector<8x32xf32>
    %339 = arith.subf %338, %332 : vector<8x32xf32>
    %340 = arith.mulf %339, %337 : vector<8x32xf32>
    %341 = arith.mulf %332, %268 : vector<8x32xf32>
    %342 = arith.addf %340, %341 : vector<8x32xf32>
    %c7_i32_97 = arith.constant 7 : i32
    %343 = arith.subi %c7_i32_97, %c4_i32 : i32
    %344 = arith.index_cast %343 : i32 to index
    %c0_98 = arith.constant 0 : index
    %c128_99 = arith.constant 128 : index
    %345 = vector.load %arg17[%344, %c0_98, %c128_99] : memref<8x8x256xf32, #tpu.memory_space<vmem>>, vector<1x8x128xf32>
    %346 = vector.shape_cast %345 : vector<1x8x128xf32> to vector<8x128xf32>
    %cst_100 = arith.constant dense<0.000000e+00> : vector<8x128xf32>
    %347 = tpu.matmul %301, %10, %cst_100 {dimension_numbers = #tpu.dot_dimension_numbers<[1], [0], [0], [1], [0, 0, 1, 1], [], []>} : vector<8x32xf32>, vector<32x128xf32>, vector<8x128xf32> -> vector<8x128xf32>
    %348 = vector.broadcast %12 : vector<1x128xf32> to vector<8x128xf32>
    %349 = arith.addf %347, %348 : vector<8x128xf32>
    %350 = vector.extract_strided_slice %346 {offsets = [0, 0], sizes = [8, 32], strides = [1, 1]} : vector<8x128xf32> to vector<8x32xf32>
    %351 = vector.extract_strided_slice %349 {offsets = [0, 0], sizes = [8, 32], strides = [1, 1]} : vector<8x128xf32> to vector<8x32xf32>
    %352 = arith.addf %350, %351 : vector<8x32xf32>
    %353 = arith.negf %352 : vector<8x32xf32>
    %354 = math.exp %353 : vector<8x32xf32>
    %cst_101 = arith.constant 1.000000e+00 : f32
    %355 = vector.broadcast %cst_101 : f32 to vector<8x32xf32>
    %356 = arith.addf %355, %354 : vector<8x32xf32>
    %357 = arith.divf %355, %356 : vector<8x32xf32>
    %358 = vector.extract_strided_slice %346 {offsets = [0, 32], sizes = [8, 32], strides = [1, 1]} : vector<8x128xf32> to vector<8x32xf32>
    %359 = vector.extract_strided_slice %349 {offsets = [0, 32], sizes = [8, 32], strides = [1, 1]} : vector<8x128xf32> to vector<8x32xf32>
    %360 = arith.addf %358, %359 : vector<8x32xf32>
    %361 = arith.negf %360 : vector<8x32xf32>
    %362 = math.exp %361 : vector<8x32xf32>
    %cst_102 = arith.constant 1.000000e+00 : f32
    %363 = vector.broadcast %cst_102 : f32 to vector<8x32xf32>
    %364 = arith.addf %363, %362 : vector<8x32xf32>
    %365 = arith.divf %363, %364 : vector<8x32xf32>
    %366 = vector.extract_strided_slice %346 {offsets = [0, 64], sizes = [8, 32], strides = [1, 1]} : vector<8x128xf32> to vector<8x32xf32>
    %367 = vector.extract_strided_slice %349 {offsets = [0, 64], sizes = [8, 32], strides = [1, 1]} : vector<8x128xf32> to vector<8x32xf32>
    %368 = arith.mulf %357, %367 : vector<8x32xf32>
    %369 = arith.addf %366, %368 : vector<8x32xf32>
    %370 = math.tanh %369 : vector<8x32xf32>
    %cst_103 = arith.constant 1.000000e+00 : f32
    %371 = vector.broadcast %cst_103 : f32 to vector<8x32xf32>
    %372 = arith.subf %371, %365 : vector<8x32xf32>
    %373 = arith.mulf %372, %370 : vector<8x32xf32>
    %374 = arith.mulf %365, %301 : vector<8x32xf32>
    %375 = arith.addf %373, %374 : vector<8x32xf32>
    %376 = arith.index_cast %c4_i32 : i32 to index
    %c0_104 = arith.constant 0 : index
    %c0_105 = arith.constant 0 : index
    %377 = vector.load %arg15[%376, %c0_104, %c0_105] : memref<8x8x32xf32, #tpu.memory_space<vmem>>, vector<1x8x32xf32>
    %378 = vector.shape_cast %377 : vector<1x8x32xf32> to vector<8x32xf32>
    %379 = vector.shape_cast %342 : vector<8x32xf32> to vector<1x8x32xf32>
    tpu.vector_store %arg15[%376, %c0_104, %c0_105], %379 {strides = array<i32>} : memref<8x8x32xf32, #tpu.memory_space<vmem>>, vector<1x8x32xf32>,
    %c7_i32_106 = arith.constant 7 : i32
    %380 = arith.subi %c7_i32_106, %c4_i32 : i32
    %381 = arith.index_cast %380 : i32 to index
    %c0_107 = arith.constant 0 : index
    %c0_108 = arith.constant 0 : index
    %382 = vector.load %arg16[%381, %c0_107, %c0_108] : memref<8x8x32xf32, #tpu.memory_space<vmem>>, vector<1x8x32xf32>
    %383 = vector.shape_cast %382 : vector<1x8x32xf32> to vector<8x32xf32>
    %384 = vector.shape_cast %375 : vector<8x32xf32> to vector<1x8x32xf32>
    tpu.vector_store %arg16[%381, %c0_107, %c0_108], %384 {strides = array<i32>} : memref<8x8x32xf32, #tpu.memory_space<vmem>>, vector<1x8x32xf32>,
    %c5_i32 = arith.constant 5 : i32
    %385 = arith.index_cast %c5_i32 : i32 to index
    %c0_109 = arith.constant 0 : index
    %c0_110 = arith.constant 0 : index
    %386 = vector.load %arg17[%385, %c0_109, %c0_110] : memref<8x8x256xf32, #tpu.memory_space<vmem>>, vector<1x8x128xf32>
    %387 = vector.shape_cast %386 : vector<1x8x128xf32> to vector<8x128xf32>
    %cst_111 = arith.constant dense<0.000000e+00> : vector<8x128xf32>
    %388 = tpu.matmul %342, %9, %cst_111 {dimension_numbers = #tpu.dot_dimension_numbers<[1], [0], [0], [1], [0, 0, 1, 1], [], []>} : vector<8x32xf32>, vector<32x128xf32>, vector<8x128xf32> -> vector<8x128xf32>
    %389 = vector.broadcast %11 : vector<1x128xf32> to vector<8x128xf32>
    %390 = arith.addf %388, %389 : vector<8x128xf32>
    %391 = vector.extract_strided_slice %387 {offsets = [0, 0], sizes = [8, 32], strides = [1, 1]} : vector<8x128xf32> to vector<8x32xf32>
    %392 = vector.extract_strided_slice %390 {offsets = [0, 0], sizes = [8, 32], strides = [1, 1]} : vector<8x128xf32> to vector<8x32xf32>
    %393 = arith.addf %391, %392 : vector<8x32xf32>
    %394 = arith.negf %393 : vector<8x32xf32>
    %395 = math.exp %394 : vector<8x32xf32>
    %cst_112 = arith.constant 1.000000e+00 : f32
    %396 = vector.broadcast %cst_112 : f32 to vector<8x32xf32>
    %397 = arith.addf %396, %395 : vector<8x32xf32>
    %398 = arith.divf %396, %397 : vector<8x32xf32>
    %399 = vector.extract_strided_slice %387 {offsets = [0, 32], sizes = [8, 32], strides = [1, 1]} : vector<8x128xf32> to vector<8x32xf32>
    %400 = vector.extract_strided_slice %390 {offsets = [0, 32], sizes = [8, 32], strides = [1, 1]} : vector<8x128xf32> to vector<8x32xf32>
    %401 = arith.addf %399, %400 : vector<8x32xf32>
    %402 = arith.negf %401 : vector<8x32xf32>
    %403 = math.exp %402 : vector<8x32xf32>
    %cst_113 = arith.constant 1.000000e+00 : f32
    %404 = vector.broadcast %cst_113 : f32 to vector<8x32xf32>
    %405 = arith.addf %404, %403 : vector<8x32xf32>
    %406 = arith.divf %404, %405 : vector<8x32xf32>
    %407 = vector.extract_strided_slice %387 {offsets = [0, 64], sizes = [8, 32], strides = [1, 1]} : vector<8x128xf32> to vector<8x32xf32>
    %408 = vector.extract_strided_slice %390 {offsets = [0, 64], sizes = [8, 32], strides = [1, 1]} : vector<8x128xf32> to vector<8x32xf32>
    %409 = arith.mulf %398, %408 : vector<8x32xf32>
    %410 = arith.addf %407, %409 : vector<8x32xf32>
    %411 = math.tanh %410 : vector<8x32xf32>
    %cst_114 = arith.constant 1.000000e+00 : f32
    %412 = vector.broadcast %cst_114 : f32 to vector<8x32xf32>
    %413 = arith.subf %412, %406 : vector<8x32xf32>
    %414 = arith.mulf %413, %411 : vector<8x32xf32>
    %415 = arith.mulf %406, %342 : vector<8x32xf32>
    %416 = arith.addf %414, %415 : vector<8x32xf32>
    %c7_i32_115 = arith.constant 7 : i32
    %417 = arith.subi %c7_i32_115, %c5_i32 : i32
    %418 = arith.index_cast %417 : i32 to index
    %c0_116 = arith.constant 0 : index
    %c128_117 = arith.constant 128 : index
    %419 = vector.load %arg17[%418, %c0_116, %c128_117] : memref<8x8x256xf32, #tpu.memory_space<vmem>>, vector<1x8x128xf32>
    %420 = vector.shape_cast %419 : vector<1x8x128xf32> to vector<8x128xf32>
    %cst_118 = arith.constant dense<0.000000e+00> : vector<8x128xf32>
    %421 = tpu.matmul %375, %10, %cst_118 {dimension_numbers = #tpu.dot_dimension_numbers<[1], [0], [0], [1], [0, 0, 1, 1], [], []>} : vector<8x32xf32>, vector<32x128xf32>, vector<8x128xf32> -> vector<8x128xf32>
    %422 = vector.broadcast %12 : vector<1x128xf32> to vector<8x128xf32>
    %423 = arith.addf %421, %422 : vector<8x128xf32>
    %424 = vector.extract_strided_slice %420 {offsets = [0, 0], sizes = [8, 32], strides = [1, 1]} : vector<8x128xf32> to vector<8x32xf32>
    %425 = vector.extract_strided_slice %423 {offsets = [0, 0], sizes = [8, 32], strides = [1, 1]} : vector<8x128xf32> to vector<8x32xf32>
    %426 = arith.addf %424, %425 : vector<8x32xf32>
    %427 = arith.negf %426 : vector<8x32xf32>
    %428 = math.exp %427 : vector<8x32xf32>
    %cst_119 = arith.constant 1.000000e+00 : f32
    %429 = vector.broadcast %cst_119 : f32 to vector<8x32xf32>
    %430 = arith.addf %429, %428 : vector<8x32xf32>
    %431 = arith.divf %429, %430 : vector<8x32xf32>
    %432 = vector.extract_strided_slice %420 {offsets = [0, 32], sizes = [8, 32], strides = [1, 1]} : vector<8x128xf32> to vector<8x32xf32>
    %433 = vector.extract_strided_slice %423 {offsets = [0, 32], sizes = [8, 32], strides = [1, 1]} : vector<8x128xf32> to vector<8x32xf32>
    %434 = arith.addf %432, %433 : vector<8x32xf32>
    %435 = arith.negf %434 : vector<8x32xf32>
    %436 = math.exp %435 : vector<8x32xf32>
    %cst_120 = arith.constant 1.000000e+00 : f32
    %437 = vector.broadcast %cst_120 : f32 to vector<8x32xf32>
    %438 = arith.addf %437, %436 : vector<8x32xf32>
    %439 = arith.divf %437, %438 : vector<8x32xf32>
    %440 = vector.extract_strided_slice %420 {offsets = [0, 64], sizes = [8, 32], strides = [1, 1]} : vector<8x128xf32> to vector<8x32xf32>
    %441 = vector.extract_strided_slice %423 {offsets = [0, 64], sizes = [8, 32], strides = [1, 1]} : vector<8x128xf32> to vector<8x32xf32>
    %442 = arith.mulf %431, %441 : vector<8x32xf32>
    %443 = arith.addf %440, %442 : vector<8x32xf32>
    %444 = math.tanh %443 : vector<8x32xf32>
    %cst_121 = arith.constant 1.000000e+00 : f32
    %445 = vector.broadcast %cst_121 : f32 to vector<8x32xf32>
    %446 = arith.subf %445, %439 : vector<8x32xf32>
    %447 = arith.mulf %446, %444 : vector<8x32xf32>
    %448 = arith.mulf %439, %375 : vector<8x32xf32>
    %449 = arith.addf %447, %448 : vector<8x32xf32>
    %450 = arith.index_cast %c5_i32 : i32 to index
    %c0_122 = arith.constant 0 : index
    %c0_123 = arith.constant 0 : index
    %451 = vector.load %arg15[%450, %c0_122, %c0_123] : memref<8x8x32xf32, #tpu.memory_space<vmem>>, vector<1x8x32xf32>
    %452 = vector.shape_cast %451 : vector<1x8x32xf32> to vector<8x32xf32>
    %453 = vector.shape_cast %416 : vector<8x32xf32> to vector<1x8x32xf32>
    tpu.vector_store %arg15[%450, %c0_122, %c0_123], %453 {strides = array<i32>} : memref<8x8x32xf32, #tpu.memory_space<vmem>>, vector<1x8x32xf32>,
    %c7_i32_124 = arith.constant 7 : i32
    %454 = arith.subi %c7_i32_124, %c5_i32 : i32
    %455 = arith.index_cast %454 : i32 to index
    %c0_125 = arith.constant 0 : index
    %c0_126 = arith.constant 0 : index
    %456 = vector.load %arg16[%455, %c0_125, %c0_126] : memref<8x8x32xf32, #tpu.memory_space<vmem>>, vector<1x8x32xf32>
    %457 = vector.shape_cast %456 : vector<1x8x32xf32> to vector<8x32xf32>
    %458 = vector.shape_cast %449 : vector<8x32xf32> to vector<1x8x32xf32>
    tpu.vector_store %arg16[%455, %c0_125, %c0_126], %458 {strides = array<i32>} : memref<8x8x32xf32, #tpu.memory_space<vmem>>, vector<1x8x32xf32>,
    %c6_i32 = arith.constant 6 : i32
    %459 = arith.index_cast %c6_i32 : i32 to index
    %c0_127 = arith.constant 0 : index
    %c0_128 = arith.constant 0 : index
    %460 = vector.load %arg17[%459, %c0_127, %c0_128] : memref<8x8x256xf32, #tpu.memory_space<vmem>>, vector<1x8x128xf32>
    %461 = vector.shape_cast %460 : vector<1x8x128xf32> to vector<8x128xf32>
    %cst_129 = arith.constant dense<0.000000e+00> : vector<8x128xf32>
    %462 = tpu.matmul %416, %9, %cst_129 {dimension_numbers = #tpu.dot_dimension_numbers<[1], [0], [0], [1], [0, 0, 1, 1], [], []>} : vector<8x32xf32>, vector<32x128xf32>, vector<8x128xf32> -> vector<8x128xf32>
    %463 = vector.broadcast %11 : vector<1x128xf32> to vector<8x128xf32>
    %464 = arith.addf %462, %463 : vector<8x128xf32>
    %465 = vector.extract_strided_slice %461 {offsets = [0, 0], sizes = [8, 32], strides = [1, 1]} : vector<8x128xf32> to vector<8x32xf32>
    %466 = vector.extract_strided_slice %464 {offsets = [0, 0], sizes = [8, 32], strides = [1, 1]} : vector<8x128xf32> to vector<8x32xf32>
    %467 = arith.addf %465, %466 : vector<8x32xf32>
    %468 = arith.negf %467 : vector<8x32xf32>
    %469 = math.exp %468 : vector<8x32xf32>
    %cst_130 = arith.constant 1.000000e+00 : f32
    %470 = vector.broadcast %cst_130 : f32 to vector<8x32xf32>
    %471 = arith.addf %470, %469 : vector<8x32xf32>
    %472 = arith.divf %470, %471 : vector<8x32xf32>
    %473 = vector.extract_strided_slice %461 {offsets = [0, 32], sizes = [8, 32], strides = [1, 1]} : vector<8x128xf32> to vector<8x32xf32>
    %474 = vector.extract_strided_slice %464 {offsets = [0, 32], sizes = [8, 32], strides = [1, 1]} : vector<8x128xf32> to vector<8x32xf32>
    %475 = arith.addf %473, %474 : vector<8x32xf32>
    %476 = arith.negf %475 : vector<8x32xf32>
    %477 = math.exp %476 : vector<8x32xf32>
    %cst_131 = arith.constant 1.000000e+00 : f32
    %478 = vector.broadcast %cst_131 : f32 to vector<8x32xf32>
    %479 = arith.addf %478, %477 : vector<8x32xf32>
    %480 = arith.divf %478, %479 : vector<8x32xf32>
    %481 = vector.extract_strided_slice %461 {offsets = [0, 64], sizes = [8, 32], strides = [1, 1]} : vector<8x128xf32> to vector<8x32xf32>
    %482 = vector.extract_strided_slice %464 {offsets = [0, 64], sizes = [8, 32], strides = [1, 1]} : vector<8x128xf32> to vector<8x32xf32>
    %483 = arith.mulf %472, %482 : vector<8x32xf32>
    %484 = arith.addf %481, %483 : vector<8x32xf32>
    %485 = math.tanh %484 : vector<8x32xf32>
    %cst_132 = arith.constant 1.000000e+00 : f32
    %486 = vector.broadcast %cst_132 : f32 to vector<8x32xf32>
    %487 = arith.subf %486, %480 : vector<8x32xf32>
    %488 = arith.mulf %487, %485 : vector<8x32xf32>
    %489 = arith.mulf %480, %416 : vector<8x32xf32>
    %490 = arith.addf %488, %489 : vector<8x32xf32>
    %c7_i32_133 = arith.constant 7 : i32
    %491 = arith.subi %c7_i32_133, %c6_i32 : i32
    %492 = arith.index_cast %491 : i32 to index
    %c0_134 = arith.constant 0 : index
    %c128_135 = arith.constant 128 : index
    %493 = vector.load %arg17[%492, %c0_134, %c128_135] : memref<8x8x256xf32, #tpu.memory_space<vmem>>, vector<1x8x128xf32>
    %494 = vector.shape_cast %493 : vector<1x8x128xf32> to vector<8x128xf32>
    %cst_136 = arith.constant dense<0.000000e+00> : vector<8x128xf32>
    %495 = tpu.matmul %449, %10, %cst_136 {dimension_numbers = #tpu.dot_dimension_numbers<[1], [0], [0], [1], [0, 0, 1, 1], [], []>} : vector<8x32xf32>, vector<32x128xf32>, vector<8x128xf32> -> vector<8x128xf32>
    %496 = vector.broadcast %12 : vector<1x128xf32> to vector<8x128xf32>
    %497 = arith.addf %495, %496 : vector<8x128xf32>
    %498 = vector.extract_strided_slice %494 {offsets = [0, 0], sizes = [8, 32], strides = [1, 1]} : vector<8x128xf32> to vector<8x32xf32>
    %499 = vector.extract_strided_slice %497 {offsets = [0, 0], sizes = [8, 32], strides = [1, 1]} : vector<8x128xf32> to vector<8x32xf32>
    %500 = arith.addf %498, %499 : vector<8x32xf32>
    %501 = arith.negf %500 : vector<8x32xf32>
    %502 = math.exp %501 : vector<8x32xf32>
    %cst_137 = arith.constant 1.000000e+00 : f32
    %503 = vector.broadcast %cst_137 : f32 to vector<8x32xf32>
    %504 = arith.addf %503, %502 : vector<8x32xf32>
    %505 = arith.divf %503, %504 : vector<8x32xf32>
    %506 = vector.extract_strided_slice %494 {offsets = [0, 32], sizes = [8, 32], strides = [1, 1]} : vector<8x128xf32> to vector<8x32xf32>
    %507 = vector.extract_strided_slice %497 {offsets = [0, 32], sizes = [8, 32], strides = [1, 1]} : vector<8x128xf32> to vector<8x32xf32>
    %508 = arith.addf %506, %507 : vector<8x32xf32>
    %509 = arith.negf %508 : vector<8x32xf32>
    %510 = math.exp %509 : vector<8x32xf32>
    %cst_138 = arith.constant 1.000000e+00 : f32
    %511 = vector.broadcast %cst_138 : f32 to vector<8x32xf32>
    %512 = arith.addf %511, %510 : vector<8x32xf32>
    %513 = arith.divf %511, %512 : vector<8x32xf32>
    %514 = vector.extract_strided_slice %494 {offsets = [0, 64], sizes = [8, 32], strides = [1, 1]} : vector<8x128xf32> to vector<8x32xf32>
    %515 = vector.extract_strided_slice %497 {offsets = [0, 64], sizes = [8, 32], strides = [1, 1]} : vector<8x128xf32> to vector<8x32xf32>
    %516 = arith.mulf %505, %515 : vector<8x32xf32>
    %517 = arith.addf %514, %516 : vector<8x32xf32>
    %518 = math.tanh %517 : vector<8x32xf32>
    %cst_139 = arith.constant 1.000000e+00 : f32
    %519 = vector.broadcast %cst_139 : f32 to vector<8x32xf32>
    %520 = arith.subf %519, %513 : vector<8x32xf32>
    %521 = arith.mulf %520, %518 : vector<8x32xf32>
    %522 = arith.mulf %513, %449 : vector<8x32xf32>
    %523 = arith.addf %521, %522 : vector<8x32xf32>
    %524 = arith.index_cast %c6_i32 : i32 to index
    %c0_140 = arith.constant 0 : index
    %c0_141 = arith.constant 0 : index
    %525 = vector.load %arg15[%524, %c0_140, %c0_141] : memref<8x8x32xf32, #tpu.memory_space<vmem>>, vector<1x8x32xf32>
    %526 = vector.shape_cast %525 : vector<1x8x32xf32> to vector<8x32xf32>
    %527 = vector.shape_cast %490 : vector<8x32xf32> to vector<1x8x32xf32>
    tpu.vector_store %arg15[%524, %c0_140, %c0_141], %527 {strides = array<i32>} : memref<8x8x32xf32, #tpu.memory_space<vmem>>, vector<1x8x32xf32>,
    %c7_i32_142 = arith.constant 7 : i32
    %528 = arith.subi %c7_i32_142, %c6_i32 : i32
    %529 = arith.index_cast %528 : i32 to index
    %c0_143 = arith.constant 0 : index
    %c0_144 = arith.constant 0 : index
    %530 = vector.load %arg16[%529, %c0_143, %c0_144] : memref<8x8x32xf32, #tpu.memory_space<vmem>>, vector<1x8x32xf32>
    %531 = vector.shape_cast %530 : vector<1x8x32xf32> to vector<8x32xf32>
    %532 = vector.shape_cast %523 : vector<8x32xf32> to vector<1x8x32xf32>
    tpu.vector_store %arg16[%529, %c0_143, %c0_144], %532 {strides = array<i32>} : memref<8x8x32xf32, #tpu.memory_space<vmem>>, vector<1x8x32xf32>,
    %c7_i32_145 = arith.constant 7 : i32
    %533 = arith.index_cast %c7_i32_145 : i32 to index
    %c0_146 = arith.constant 0 : index
    %c0_147 = arith.constant 0 : index
    %534 = vector.load %arg17[%533, %c0_146, %c0_147] : memref<8x8x256xf32, #tpu.memory_space<vmem>>, vector<1x8x128xf32>
    %535 = vector.shape_cast %534 : vector<1x8x128xf32> to vector<8x128xf32>
    %cst_148 = arith.constant dense<0.000000e+00> : vector<8x128xf32>
    %536 = tpu.matmul %490, %9, %cst_148 {dimension_numbers = #tpu.dot_dimension_numbers<[1], [0], [0], [1], [0, 0, 1, 1], [], []>} : vector<8x32xf32>, vector<32x128xf32>, vector<8x128xf32> -> vector<8x128xf32>
    %537 = vector.broadcast %11 : vector<1x128xf32> to vector<8x128xf32>
    %538 = arith.addf %536, %537 : vector<8x128xf32>
    %539 = vector.extract_strided_slice %535 {offsets = [0, 0], sizes = [8, 32], strides = [1, 1]} : vector<8x128xf32> to vector<8x32xf32>
    %540 = vector.extract_strided_slice %538 {offsets = [0, 0], sizes = [8, 32], strides = [1, 1]} : vector<8x128xf32> to vector<8x32xf32>
    %541 = arith.addf %539, %540 : vector<8x32xf32>
    %542 = arith.negf %541 : vector<8x32xf32>
    %543 = math.exp %542 : vector<8x32xf32>
    %cst_149 = arith.constant 1.000000e+00 : f32
    %544 = vector.broadcast %cst_149 : f32 to vector<8x32xf32>
    %545 = arith.addf %544, %543 : vector<8x32xf32>
    %546 = arith.divf %544, %545 : vector<8x32xf32>
    %547 = vector.extract_strided_slice %535 {offsets = [0, 32], sizes = [8, 32], strides = [1, 1]} : vector<8x128xf32> to vector<8x32xf32>
    %548 = vector.extract_strided_slice %538 {offsets = [0, 32], sizes = [8, 32], strides = [1, 1]} : vector<8x128xf32> to vector<8x32xf32>
    %549 = arith.addf %547, %548 : vector<8x32xf32>
    %550 = arith.negf %549 : vector<8x32xf32>
    %551 = math.exp %550 : vector<8x32xf32>
    %cst_150 = arith.constant 1.000000e+00 : f32
    %552 = vector.broadcast %cst_150 : f32 to vector<8x32xf32>
    %553 = arith.addf %552, %551 : vector<8x32xf32>
    %554 = arith.divf %552, %553 : vector<8x32xf32>
    %555 = vector.extract_strided_slice %535 {offsets = [0, 64], sizes = [8, 32], strides = [1, 1]} : vector<8x128xf32> to vector<8x32xf32>
    %556 = vector.extract_strided_slice %538 {offsets = [0, 64], sizes = [8, 32], strides = [1, 1]} : vector<8x128xf32> to vector<8x32xf32>
    %557 = arith.mulf %546, %556 : vector<8x32xf32>
    %558 = arith.addf %555, %557 : vector<8x32xf32>
    %559 = math.tanh %558 : vector<8x32xf32>
    %cst_151 = arith.constant 1.000000e+00 : f32
    %560 = vector.broadcast %cst_151 : f32 to vector<8x32xf32>
    %561 = arith.subf %560, %554 : vector<8x32xf32>
    %562 = arith.mulf %561, %559 : vector<8x32xf32>
    %563 = arith.mulf %554, %490 : vector<8x32xf32>
    %564 = arith.addf %562, %563 : vector<8x32xf32>
    %c7_i32_152 = arith.constant 7 : i32
    %565 = arith.subi %c7_i32_152, %c7_i32_145 : i32
    %566 = arith.index_cast %565 : i32 to index
    %c0_153 = arith.constant 0 : index
    %c128_154 = arith.constant 128 : index
    %567 = vector.load %arg17[%566, %c0_153, %c128_154] : memref<8x8x256xf32, #tpu.memory_space<vmem>>, vector<1x8x128xf32>
    %568 = vector.shape_cast %567 : vector<1x8x128xf32> to vector<8x128xf32>
    %cst_155 = arith.constant dense<0.000000e+00> : vector<8x128xf32>
    %569 = tpu.matmul %523, %10, %cst_155 {dimension_numbers = #tpu.dot_dimension_numbers<[1], [0], [0], [1], [0, 0, 1, 1], [], []>} : vector<8x32xf32>, vector<32x128xf32>, vector<8x128xf32> -> vector<8x128xf32>
    %570 = vector.broadcast %12 : vector<1x128xf32> to vector<8x128xf32>
    %571 = arith.addf %569, %570 : vector<8x128xf32>
    %572 = vector.extract_strided_slice %568 {offsets = [0, 0], sizes = [8, 32], strides = [1, 1]} : vector<8x128xf32> to vector<8x32xf32>
    %573 = vector.extract_strided_slice %571 {offsets = [0, 0], sizes = [8, 32], strides = [1, 1]} : vector<8x128xf32> to vector<8x32xf32>
    %574 = arith.addf %572, %573 : vector<8x32xf32>
    %575 = arith.negf %574 : vector<8x32xf32>
    %576 = math.exp %575 : vector<8x32xf32>
    %cst_156 = arith.constant 1.000000e+00 : f32
    %577 = vector.broadcast %cst_156 : f32 to vector<8x32xf32>
    %578 = arith.addf %577, %576 : vector<8x32xf32>
    %579 = arith.divf %577, %578 : vector<8x32xf32>
    %580 = vector.extract_strided_slice %568 {offsets = [0, 32], sizes = [8, 32], strides = [1, 1]} : vector<8x128xf32> to vector<8x32xf32>
    %581 = vector.extract_strided_slice %571 {offsets = [0, 32], sizes = [8, 32], strides = [1, 1]} : vector<8x128xf32> to vector<8x32xf32>
    %582 = arith.addf %580, %581 : vector<8x32xf32>
    %583 = arith.negf %582 : vector<8x32xf32>
    %584 = math.exp %583 : vector<8x32xf32>
    %cst_157 = arith.constant 1.000000e+00 : f32
    %585 = vector.broadcast %cst_157 : f32 to vector<8x32xf32>
    %586 = arith.addf %585, %584 : vector<8x32xf32>
    %587 = arith.divf %585, %586 : vector<8x32xf32>
    %588 = vector.extract_strided_slice %568 {offsets = [0, 64], sizes = [8, 32], strides = [1, 1]} : vector<8x128xf32> to vector<8x32xf32>
    %589 = vector.extract_strided_slice %571 {offsets = [0, 64], sizes = [8, 32], strides = [1, 1]} : vector<8x128xf32> to vector<8x32xf32>
    %590 = arith.mulf %579, %589 : vector<8x32xf32>
    %591 = arith.addf %588, %590 : vector<8x32xf32>
    %592 = math.tanh %591 : vector<8x32xf32>
    %cst_158 = arith.constant 1.000000e+00 : f32
    %593 = vector.broadcast %cst_158 : f32 to vector<8x32xf32>
    %594 = arith.subf %593, %587 : vector<8x32xf32>
    %595 = arith.mulf %594, %592 : vector<8x32xf32>
    %596 = arith.mulf %587, %523 : vector<8x32xf32>
    %597 = arith.addf %595, %596 : vector<8x32xf32>
    %598 = arith.index_cast %c7_i32_145 : i32 to index
    %c0_159 = arith.constant 0 : index
    %c0_160 = arith.constant 0 : index
    %599 = vector.load %arg15[%598, %c0_159, %c0_160] : memref<8x8x32xf32, #tpu.memory_space<vmem>>, vector<1x8x32xf32>
    %600 = vector.shape_cast %599 : vector<1x8x32xf32> to vector<8x32xf32>
    %601 = vector.shape_cast %564 : vector<8x32xf32> to vector<1x8x32xf32>
    tpu.vector_store %arg15[%598, %c0_159, %c0_160], %601 {strides = array<i32>} : memref<8x8x32xf32, #tpu.memory_space<vmem>>, vector<1x8x32xf32>,
    %c7_i32_161 = arith.constant 7 : i32
    %602 = arith.subi %c7_i32_161, %c7_i32_145 : i32
    %603 = arith.index_cast %602 : i32 to index
    %c0_162 = arith.constant 0 : index
    %c0_163 = arith.constant 0 : index
    %604 = vector.load %arg16[%603, %c0_162, %c0_163] : memref<8x8x32xf32, #tpu.memory_space<vmem>>, vector<1x8x32xf32>
    %605 = vector.shape_cast %604 : vector<1x8x32xf32> to vector<8x32xf32>
    %606 = vector.shape_cast %597 : vector<8x32xf32> to vector<1x8x32xf32>
    tpu.vector_store %arg16[%603, %c0_162, %c0_163], %606 {strides = array<i32>} : memref<8x8x32xf32, #tpu.memory_space<vmem>>, vector<1x8x32xf32>,
    %c8_i32 = arith.constant 8 : i32
    %c0_164 = arith.constant 0 : index
    %c0_165 = arith.constant 0 : index
    %607 = vector.load %arg12[%c0_164, %c0_165] : memref<8x32xf32, #tpu.memory_space<vmem>>, vector<8x32xf32>
    tpu.vector_store %arg12[%c0_164, %c0_165], %564 {strides = array<i32>} : memref<8x32xf32, #tpu.memory_space<vmem>>, vector<8x32xf32>,
    %c0_166 = arith.constant 0 : index
    %c0_167 = arith.constant 0 : index
    %608 = vector.load %arg13[%c0_166, %c0_167] : memref<8x32xf32, #tpu.memory_space<vmem>>, vector<8x32xf32>
    tpu.vector_store %arg13[%c0_166, %c0_167], %597 {strides = array<i32>} : memref<8x32xf32, #tpu.memory_space<vmem>>, vector<8x32xf32>,
    %c0_168 = arith.constant 0 : index
    %c0_169 = arith.constant 0 : index
    %c0_170 = arith.constant 0 : index
    %609 = vector.load %arg15[%c0_168, %c0_169, %c0_170] : memref<8x8x32xf32, #tpu.memory_space<vmem>>, vector<8x8x32xf32>
    %610 = vector.shape_cast %609 : vector<8x8x32xf32> to vector<64x32xf32>
    %c0_171 = arith.constant 0 : index
    %c0_172 = arith.constant 0 : index
    %c0_173 = arith.constant 0 : index
    %611 = vector.load %arg16[%c0_171, %c0_172, %c0_173] : memref<8x8x32xf32, #tpu.memory_space<vmem>>, vector<8x8x32xf32>
    %612 = vector.shape_cast %611 : vector<8x8x32xf32> to vector<64x32xf32>
    %c0_174 = arith.constant 0 : index
    %c0_175 = arith.constant 0 : index
    %613 = vector.load %arg7[%c0_174, %c0_175] : memref<32x128xf32, #tpu.memory_space<vmem>>, vector<32x128xf32>
    %cst_176 = arith.constant dense<0.000000e+00> : vector<64x128xf32>
    %614 = tpu.matmul %610, %613, %cst_176 {dimension_numbers = #tpu.dot_dimension_numbers<[1], [0], [0], [1], [0, 0, 1, 1], [], []>} : vector<64x32xf32>, vector<32x128xf32>, vector<64x128xf32> -> vector<64x128xf32>
    %c0_177 = arith.constant 0 : index
    %c0_178 = arith.constant 0 : index
    %615 = vector.load %arg8[%c0_177, %c0_178] : memref<32x128xf32, #tpu.memory_space<vmem>>, vector<32x128xf32>
    %cst_179 = arith.constant dense<0.000000e+00> : vector<64x128xf32>
    %616 = tpu.matmul %612, %615, %cst_179 {dimension_numbers = #tpu.dot_dimension_numbers<[1], [0], [0], [1], [0, 0, 1, 1], [], []>} : vector<64x32xf32>, vector<32x128xf32>, vector<64x128xf32> -> vector<64x128xf32>
    %617 = arith.addf %614, %616 : vector<64x128xf32>
    %c0_180 = arith.constant 0 : index
    %c0_181 = arith.constant 0 : index
    %618 = vector.load %arg9[%c0_180, %c0_181] : memref<1x128xf32, #tpu.memory_space<vmem>>, vector<1x128xf32>
    %619 = vector.broadcast %618 : vector<1x128xf32> to vector<64x128xf32>
    %620 = arith.addf %617, %619 : vector<64x128xf32>
    %621 = vector.shape_cast %620 : vector<64x128xf32> to vector<8x8x128xf32>
    %c0_182 = arith.constant 0 : index
    %c0_183 = arith.constant 0 : index
    %c0_184 = arith.constant 0 : index
    %622 = vector.load %arg14[%c0_182, %c0_183, %c0_184] : memref<8x8x128xf32, #tpu.memory_space<vmem>>, vector<8x8x128xf32>
    tpu.vector_store %arg14[%c0_182, %c0_183, %c0_184], %621 {strides = array<i32>} : memref<8x8x128xf32, #tpu.memory_space<vmem>>, vector<8x8x128xf32>,
    return
  }
}

</mosaic_0001>

<bundles_post_ra>
// kernel: mega_cell_forward.1
= control target key start
LH: loop header
LB: loop body
LE: loop exit
PB: predicated region body
PF: predicated region fallthrough
CT: control target
= control target key end

     0   :  { %20 = vsyncpa [#allocation6], 0  ;;  %v2938_v5 = vmov 0.0   ;;  %vm70_vm0 = vcmask 130048   ;;  %v2939_v11 = vmov 0.0|0.0   ;;  %s3537_s0 = inlined_call_operand.vmem [shape: f32[8,8,16], index: 0, kind: input, shape index: {}]   ;;  %s3538_s1 = inlined_call_operand.vmem [shape: f32[16,256], index: 1, kind: input, shape index: {}]   ;;  %s3539_s2 = inlined_call_operand.vmem [shape: f32[1,256], index: 2, kind: input, shape index: {}]   ;;  %s3540_s3 = inlined_call_operand.vmem [shape: f32[32,128], index: 3, kind: input, shape index: {}]   ;;  %s3541_s4 = inlined_call_operand.vmem [shape: f32[1,128], index: 4, kind: input, shape index: {}]   ;;  %s3542_s5 = inlined_call_operand.vmem [shape: f32[32,128], index: 5, kind: input, shape index: {}]   ;;  %s3543_s6 = inlined_call_operand.vmem [shape: f32[1,128], index: 6, kind: input, shape index: {}]   ;;  %s3544_s7 = inlined_call_operand.vmem [shape: f32[32,128], index: 7, kind: input, shape index: {}]   ;;  %s3545_s8 = inlined_call_operand.vmem [shape: f32[32,128], index: 8, kind: input, shape index: {}]   ;;  %s3546_s9 = inlined_call_operand.vmem [shape: f32[1,128], index: 9, kind: input, shape index: {}]   ;;  %s3547_s10 = inlined_call_operand.vmem [shape: f32[8,32], index: 10, kind: input, shape index: {}]   ;;  %s3548_s11 = inlined_call_operand.vmem [shape: f32[8,32], index: 11, kind: input, shape index: {}]   ;;  %s3549_s12 = inlined_call_operand.hbm [shape: f32[8,32], index: 12, kind: output, shape index: {0}]   ;;  %s3550_s13 = inlined_call_operand.hbm [shape: f32[8,32], index: 13, kind: output, shape index: {1}]   ;;  %s3551_s14 = inlined_call_operand.vmem [shape: f32[8,8,128], index: 14, kind: output, shape index: {2}]  }
   0x1   :  { %v55_v0 = vld [vmem:[%s3538_s1 + $0x8] sm:$0xff]  ;;  %v57_v1 = vld [vmem:[%s3538_s1 + $0x18] sm:$0xff]  ;;  %v54_v2 = vld [vmem:[%s3538_s1] sm:$0xff]  ;;  %183 = vmatprep.mubr.f32.mxu1 %v2938_v5  ;;  %159 = vmatprep.mubr.f32.mxu0 %v2938_v5 }
   0x2   :  { %v2660_v3 = vpack.c.bf16 %v57_v1, %v55_v0  ;;  %v56_v4 = vld [vmem:[%s3538_s1 + $0x10] sm:$0xff]  ;;  %v224_v6 = vld [vmem:[%s3540_s3] sm:$0xff]  ;;  %v225_v8 = vld [vmem:[%s3540_s3 + $0x8] sm:$0xff] }
   0x3   :  { %v2662_v7 = vpack.c.bf16 %v56_v4, %v54_v2  ;;  %v50_v9 = vld [vmem:[%s3537_s0 + $0x20] sm:$0xff]  ;;  %v3044_v10 = vpack.c.bf16 %v225_v8, %v224_v6  ;;  %v226_v12 = vld [vmem:[%s3540_s3 + $0x10] sm:$0xff]  ;;  %v227_v13 = vld [vmem:[%s3540_s3 + $0x18] sm:$0xff] }
   0x4   :  { %2776 = vmatprep.subr.bf16.mxu1 %v2660_v3  ;;  %2661 = vmatprep.subr.bf16.mxu0 %v2660_v3  ;;  %v46_v14 = vld [vmem:[%s3537_s0] sm:$0xff] }
   0x5   :  { %2777 = vmatpush1.bf16.msra.mxu1 %v2662_v7  ;;  %2663 = vmatpush1.bf16.msra.mxu0 %v2662_v7 }
   0x6   :  { %2664 = vmatprep.subr.bf16.mxu1 %v2939_v11  ;;  %2688 = vmatprep.subr.bf16.mxu0 %v2939_v11 }
   0x7   :  { %21 = vsyncpa [#allocation8], 0  ;;  %v51_v15 = vld [vmem:[%s3537_s0 + $0x28] sm:$0xff]  ;;  %v3064_v16 = vpack.c.bf16 %v227_v13, %v226_v12  ;;  %v52_v17 = vld [vmem:[%s3537_s0 + $0x30] sm:$0xff]  ;;  %vm2940_vm1 = vmmov 0   ;;  %vm243_vm2 = vcmask 261120   ;;  %v60_v45 = vlaneseq }
   0x8   :  { %2285 = vmatmul.mubr.msk.f32.vlgmr.msra.gmra.mrb[0].mxu1 %vm70_vm0, %v50_v9  ;;  %2281 = vmatmul.mubr.msk.f32.vlgmr.msra.gmra.mrb[0].mxu0 %vm70_vm0, %v46_v14  ;;  %v53_v18 = vld [vmem:[%s3537_s0 + $0x38] sm:$0xff]  ;;  %v228_v19 = vld [vmem:[%s3542_s5] sm:$0xff]  ;;  %v229_v20 = vld [vmem:[%s3542_s5 + $0x8] sm:$0xff]  ;;  %s2941_s15 = smov 64   ;;  %s2945_s3 = smov [#allocation7]  }
   0x9   :  { %2666 = vmatpush3.bf16.msra.mxu1 %v3044_v10  ;;  %189 = vmatprep.mubr.f32.mxu1 %v2938_v5  ;;  %v3096_v21 = vld [vmem:[%s3547_s10] sm:$0xff]  ;;  %v3098_v22 = vpack.c.bf16 %v229_v20, %v228_v19  ;;  %v230_v23 = vld [vmem:[%s3542_s5 + $0x10] sm:$0xff]  ;;  %v231_v24 = vld [vmem:[%s3542_s5 + $0x18] sm:$0xff]  ;;  %v61_v46 = vshrl.u32 %v60_v45, 7 }
   0xa   :  { %2667 = vmatprep.subr.bf16.mxu1 %v2939_v11  ;;  %165 = vmatprep.mubr.f32.mxu0 %v2938_v5  ;;  %v3109_v25 = vpack.c.bf16 %v231_v24, %v230_v23  ;;  %v235_v26 = vld [vmem:[%s3548_s11] sm:$0xff]  ;;  %v47_v13 = vld [vmem:[%s3537_s0 + $0x8] sm:$0xff] }
   0xb   :  { %2690 = vmatpush3.bf16.msra.mxu0 %v3044_v10  ;;  %v3145_v37 = vld [vmem:[%s3541_s4] ss:$0 sm:$0xff]  ;;  %v62_v47 = vsub.s32 0, %v61_v46  ;;  %v66_v51 = vsub.s32 1, %v61_v46 }
   0xc   :  { %2286 = vmatmul.mubr.msk.f32.gmra.mrb[2].mxu1 %vm70_vm0, %v51_v15  ;;  %2691 = vmatprep.subr.bf16.mxu0 %v2939_v11  ;;  %v3152_v41 = vld [vmem:[%s3543_s6] ss:$0 sm:$0xff]  ;;  %s2943_s6 = smov 96  }
   0xd   :  { %195 = vmatprep.mubr.f32.mxu1 %v2938_v5  ;;  %2669 = vmatpush3.bf16.msra.mxu1 %v3064_v16  ;;  %v58_v48 = vld [vmem:[%s3539_s2] sm:$0x3]  ;;  %s2942_s2 = smov 32  }
   0xe   :  { %2670 = vmatprep.subr.bf16.mxu1 %v2939_v11  ;;  %v3159_v49 = vrot.slane %v58_v48, %v62_v47  ;;  %v3162_v53 = vrot.slane %v58_v48, %v66_v51  ;;  %2282 = vmatmul.mubr.msk.f32.gmra.mrb[2].mxu0 %vm70_vm0, %v47_v13 }
   0xf   :  { %2693 = vmatpush3.bf16.msra.mxu0 %v3064_v16  ;;  %171 = vmatprep.mubr.f32.mxu0 %v2938_v5 }
  0x10   :  { %2287 = vmatmul.mubr.msk.f32.gmra.mrb[4].mxu1 %vm70_vm0, %v52_v17  ;;  %2700 = vmatprep.subr.bf16.mxu0 %v2939_v11 }
  0x11   :  { %201 = vmatprep.mubr.f32.mxu1 %v2938_v5 }
  0x14   :  { %2288 = vmatmul.mubr.msk.f32.gmra.mrb[6].mxu1 %vm70_vm0, %v53_v18 }
  0x15   :  { %2452 = vmatprep.mubr.msk.f32.mxu1 %vm2940_vm1, %v2938_v5 }
  0x18   :  { %2453 = vmatmul.mubr.msk.f32.vlgmr.msra.gmra.mrb[8].mxu1 %vm243_vm2, %v3096_v21 }
  0x19   :  { %2672 = vmatpush3.bf16.msra.mxu1 %v3098_v22  ;;  %2463 = vmatprep.mubr.msk.f32.mxu1 %vm2940_vm1, %v2938_v5 }
  0x1a   :  { %2673 = vmatprep.subr.bf16.mxu1 %v2939_v11 }
  0x1d   :  { %2675 = vmatpush3.bf16.msra.mxu1 %v3109_v25 }
  0x1e   :  { %2676 = vmatprep.subr.bf16.mxu1 %v2939_v11 }
  0x20   :  { %2464 = vmatmul.mubr.msk.f32.vlgmr.msra.gmra.mrb[10].mxu1 %vm243_vm2, %v235_v26 }
  0x21   :  { %2678 = vmatpush3.bf16.msra.mxu1 %v3044_v10  ;;  %2474 = vmatprep.mubr.msk.f32.mxu1 %vm2940_vm1, %v2938_v5 }
  0x22   :  { %2679 = vmatprep.subr.bf16.mxu1 %v2939_v11 }
  0x25   :  { %2681 = vmatpush3.bf16.msra.mxu1 %v3064_v16 }
  0x26   :  { %2682 = vmatprep.subr.bf16.mxu1 %v2939_v11 }
  0xdb   :  { %v3126_v27 = vpop.f32.mrb[0].mxu1  ;;  %v161_v28 = vpop.f32.mrb[0].mxu0 }
  0xdc   :  { %v3128_v29 = vpop.f32.mrb[1].mxu1  ;;  %v3130_v30 = vpop.f32.mrb[1].mxu0  ;;  %v162_v50 = vadd.f32 %v161_v28, %v3159_v49 }
  0xdf   :  { %v3132_v31 = vpop.f32.mrb[2].mxu1 }
  0xe0   :  { %v3134_v32 = vpop.f32.mrb[3].mxu1 }
  0xe3   :  { %v3136_v33 = vpop.f32.mrb[4].mxu1 }
  0xe4   :  { %v3138_v34 = vpop.f32.mrb[5].mxu1 }
  0xe7   :  { %v3140_v35 = vpop.f32.mrb[6].mxu1 }
  0xe8   :  { %v205_v36 = vpop.f32.mrb[7].mxu1 }
  0xe9   :  { %v206_v55 = vadd.f32 %v205_v36, %v3162_v53 }
  0xeb   :  { %v313_v38 = vpop.f32.mrb[8].mxu1 }
  0xec   :  { %v314_v39 = vadd.f32 %v3145_v37, %v313_v38  ;;  %v2454_v40 = vpop.f32.mrb[9].mxu1 }
  0xed   :  { %v167_v40 = vpop.f32.mrb[2].mxu0 }
  0xee   :  { %325 = vrot.lane.b32.xlu0 %v314_v39, %s2941_s15  ;;  %v317_v52 = vadd.f32 %v314_v39, %v162_v50 }
  0xf0   :  { %v2291_v54 = vmul.f32 -1.442695, %v317_v52 }
  0xf2   :  { %2794 = vpow2.f32 %v2291_v54  ;;  %v200_v54 = vadd.f32 %v3138_v34, %v3162_v53 }
  0xf3   :  { %v423_v42 = vpop.f32.mrb[10].mxu1 }
  0xf4   :  { %v424_v43 = vadd.f32 %v3152_v41, %v423_v42  ;;  %v2465_v44 = vpop.f32.mrb[11].mxu1  ;;  %v3199_v42 = vpop.f32.mrb[3].mxu0 }
  0xf6   :  { %435 = vrot.lane.b32.xlu0 %v424_v43, %s2941_s15  ;;  %v427_v56 = vadd.f32 %v424_v43, %v206_v55 }
  0xf8   :  { %v2294_v57 = vmul.f32 -1.442695, %v427_v56 }
  0xfa   :  { %2796 = vpow2.f32 %v2294_v57 }
  0xfc   :  { %v2795_v58 = vpop.eup %2794 }
  0xfd   :  { %v321_v59 = vadd.f32 1.0, %v2795_v58 }
  0xff   :  { %2798 = vrcp.f32 %v321_v59 }
 0x104   :  { %v2797_v60 = vpop.eup %2796 }
 0x105   :  { %v431_v61 = vadd.f32 1.0, %v2797_v60 }
 0x107   :  { %2800 = vrcp.f32 %v431_v61 }
 0x109   :  { %v2799_v62 = vpop.eup %2798 }
 0x10a   :  { %v335_v15 = vsub.f32 1.0, %v2799_v62 }
 0x111   :  { %v2801_v1 = vpop.eup %2800 }
 0x112   :  { %v445_v23 = vsub.f32 1.0, %v2801_v1 }
 0x160   :  { %v326_v63 = vpop.permute.xlu0 %325 }
 0x161   :  { %v328_v0 = vmul.f32 %v2799_v62, %v326_v63 }
 0x163   :  { %330 = vrot.lane.b32.xlu1 %v328_v0, %s2941_s15 }
 0x168   :  { %v436_v2 = vpop.permute.xlu0 %435 }
 0x169   :  { %v438_v3 = vmul.f32 %v2801_v1, %v436_v2 }
 0x16b   :  { %440 = vrot.lane.b32.xlu1 %v438_v3, %s2941_s15 }
 0x16f   :  { %341 = vrot.lane.b32.xlu1 %v3096_v21, %s2942_s2 }
 0x173   :  { %451 = vrot.lane.b32.xlu1 %v235_v26, %s2942_s2  ;;  %s2265_s2 = sshll.u32 %s2945_s3, 4  ;;  %s2266_s2 = int_to_ptr.vmem [resolvable:$true] %s2265_s2 }
 0x1d5   :  { %v331_v4 = vpop.permute.xlu1 %330 }
 0x1d6   :  { %v333_v6 = vadd.f32 %v331_v4, %v162_v50  ;;  %v168_v50 = vadd.f32 %v167_v40, %v3159_v49 }
 0x1d8   :  { %2802 = vtanh.f32 %v333_v6 }
 0x1dd   :  { %v441_v7 = vpop.permute.xlu1 %440 }
 0x1de   :  { %v443_v8 = vadd.f32 %v441_v7, %v206_v55 }
 0x1e0   :  { %2804 = vtanh.f32 %v443_v8  ;;  %v48_v8 = vld [vmem:[%s3537_s0 + $0x10] sm:$0xff] }
 0x1e1   :  { %v342_v14 = vpop.permute.xlu1 %341  ;;  %2283 = vmatmul.mubr.msk.f32.gmra.mrb[4].mxu0 %vm70_vm0, %v48_v8 }
 0x1e2   :  { %v2803_v9 = vpop.eup %2802  ;;  %v344_v18 = vmul.f32 %v2799_v62, %v342_v14  ;;  %177 = vmatprep.mubr.f32.mxu0 %v2938_v5 }
 0x1e3   :  { %337 = vrot.lane.b32.xlu0 %v2803_v9, %s2943_s6  ;;  %v49_v9 = vld [vmem:[%s3537_s0 + $0x18] sm:$0xff] }
 0x1e5   :  { %v452_v21 = vpop.permute.xlu1 %451  ;;  %2284 = vmatmul.mubr.msk.f32.gmra.mrb[6].mxu0 %vm70_vm0, %v49_v9 }
 0x1e6   :  { %v454_v26 = vmul.f32 %v2801_v1, %v452_v21  ;;  %2496 = vmatprep.mubr.msk.f32.mxu0 %vm2940_vm1, %v2938_v5 }
 0x1ea   :  { %v2805_v12 = vpop.eup %2804 }
 0x1eb   :  { %447 = vrot.lane.b32.xlu0 %v2805_v12, %s2943_s6 }
 0x255   :  { %v338_v17 = vpop.permute.xlu0 %337 }
 0x256   :  { %v340_v19 = vmul.f32 %v338_v17, %v335_v15 }
 0x258   :  { %v3175_v20 = vadd.f32 %v344_v18, %v340_v19 }
 0x25a   :  { %457 = vrot.lane.b32.xlu0 %v3175_v20, %s2943_s6 }
 0x25d   :  { %v448_v24 = vpop.permute.xlu0 %447 }
 0x25e   :  { %v450_v28 = vmul.f32 %v448_v24, %v445_v23 }
 0x260   :  { %v3179_v36 = vadd.f32 %v454_v26, %v450_v28 }
 0x262   :  { %462 = vrot.lane.b32.xlu1 %v3179_v36, %s2943_s6 }
 0x2b4   :  { %v173_v28 = vpop.f32.mrb[4].mxu0 }
 0x2cc   :  { %v458_v38 = vpop.permute.xlu0 %457 }
 0x2cd   :  { %460 = vst.msk [vmem:[#allocation2] sm:$0xff] %vm243_vm2, %v458_v38  ;;  %2475 = vmatmul.mubr.msk.f32.vlgmr.msra.gmra.mrb[12].mxu1 %vm243_vm2, %v458_v38  ;;  %v3233_v38 = vpop.f32.mrb[5].mxu0 }
 0x2ce   :  { %2684 = vmatpush3.bf16.msra.mxu1 %v3098_v22  ;;  %2485 = vmatprep.mubr.msk.f32.mxu1 %vm2940_vm1, %v2938_v5 }
 0x2cf   :  { %2685 = vmatprep.subr.bf16.mxu1 %v2939_v11 }
 0x2d2   :  { %2687 = vmatpush3.bf16.msra.mxu1 %v3109_v25 }
 0x2d3   :  { %2694 = vmatprep.subr.bf16.mxu1 %v2939_v11 }
 0x2d4   :  { %v463_v39 = vpop.permute.xlu1 %462 }
 0x2d5   :  { %466 = vst.msk [vmem:[#allocation3 + $0x38] sm:$0xff] %vm243_vm2, %v463_v39  ;;  %2486 = vmatmul.mubr.msk.f32.vlgmr.msra.gmra.mrb[14].mxu1 %vm243_vm2, %v463_v39 }
 0x2d6   :  { %2696 = vmatpush3.bf16.msra.mxu1 %v3098_v22  ;;  %2507 = vmatprep.mubr.msk.f32.mxu1 %vm2940_vm1, %v2938_v5 }
 0x2d7   :  { %2697 = vmatprep.subr.bf16.mxu1 %v2939_v11 }
 0x2da   :  { %2699 = vmatpush3.bf16.msra.mxu1 %v3109_v25 }
 0x2db   :  { %2706 = vmatprep.subr.bf16.mxu1 %v2939_v11 }
 0x3a0   :  { %v537_v43 = vpop.f32.mrb[12].mxu1 }
 0x3a1   :  { %v538_v44 = vadd.f32 %v3145_v37, %v537_v43  ;;  %v2476_v45 = vpop.f32.mrb[13].mxu1 }
 0x3a3   :  { %549 = vrot.lane.b32.xlu1 %v538_v44, %s2941_s15  ;;  %v541_v51 = vadd.f32 %v538_v44, %v168_v50 }
 0x3a5   :  { %v2296_v52 = vmul.f32 -1.442695, %v541_v51 }
 0x3a7   :  { %2806 = vpow2.f32 %v2296_v52 }
 0x3a8   :  { %v637_v46 = vpop.f32.mrb[14].mxu1 }
 0x3a9   :  { %v638_v47 = vadd.f32 %v3152_v41, %v637_v46  ;;  %v2487_v48 = vpop.f32.mrb[15].mxu1 }
 0x3ab   :  { %649 = vrot.lane.b32.xlu0 %v638_v47, %s2941_s15  ;;  %v641_v55 = vadd.f32 %v638_v47, %v200_v54 }
 0x3ad   :  { %v2298_v56 = vmul.f32 -1.442695, %v641_v55 }
 0x3af   :  { %2808 = vpow2.f32 %v2298_v56 }
 0x3b1   :  { %v2807_v57 = vpop.eup %2806 }
 0x3b2   :  { %v545_v58 = vadd.f32 1.0, %v2807_v57 }
 0x3b4   :  { %2810 = vrcp.f32 %v545_v58 }
 0x3b9   :  { %v2809_v59 = vpop.eup %2808 }
 0x3ba   :  { %v645_v60 = vadd.f32 1.0, %v2809_v59 }
 0x3bc   :  { %2812 = vrcp.f32 %v645_v60 }
 0x3be   :  { %v2811_v61 = vpop.eup %2810 }
 0x3bf   :  { %v559_v13 = vsub.f32 1.0, %v2811_v61  ;;  %v565_v15 = vmul.f32 %v2811_v61, %v3175_v20  ;;  %v3235_v20 = vpop.f32.mrb[6].mxu0 }
 0x3c0   :  { %v3237_v39 = vpop.f32.mrb[7].mxu0 }
 0x3c6   :  { %v2813_v0 = vpop.eup %2812 }
 0x3c7   :  { %v659_v19 = vsub.f32 1.0, %v2813_v0  ;;  %v665_v23 = vmul.f32 %v2813_v0, %v3179_v36 }
 0x415   :  { %v550_v62 = vpop.permute.xlu1 %549 }
 0x416   :  { %v552_v63 = vmul.f32 %v2811_v61, %v550_v62 }
 0x418   :  { %554 = vrot.lane.b32.xlu1 %v552_v63, %s2941_s15 }
 0x41d   :  { %v650_v1 = vpop.permute.xlu0 %649 }
 0x41e   :  { %v652_v2 = vmul.f32 %v2813_v0, %v650_v1 }
 0x420   :  { %654 = vrot.lane.b32.xlu0 %v652_v2, %s2941_s15 }
 0x48a   :  { %v555_v34 = vpop.permute.xlu1 %554 }
 0x48b   :  { %v557_v3 = vadd.f32 %v555_v34, %v168_v50  ;;  %v174_v50 = vadd.f32 %v173_v28, %v3159_v49 }
 0x48d   :  { %2814 = vtanh.f32 %v557_v3 }
 0x492   :  { %v655_v4 = vpop.permute.xlu0 %654 }
 0x493   :  { %v657_v6 = vadd.f32 %v655_v4, %v200_v54  ;;  %v194_v54 = vadd.f32 %v3134_v32, %v3162_v53 }
 0x495   :  { %2816 = vtanh.f32 %v657_v6 }
 0x497   :  { %v2815_v7 = vpop.eup %2814 }
 0x498   :  { %561 = vrot.lane.b32.xlu1 %v2815_v7, %s2943_s6 }
 0x49f   :  { %v2817_v12 = vpop.eup %2816 }
 0x4a0   :  { %661 = vrot.lane.b32.xlu0 %v2817_v12, %s2943_s6 }
 0x50a   :  { %v562_v14 = vpop.permute.xlu1 %561 }
 0x50b   :  { %v564_v17 = vmul.f32 %v562_v14, %v559_v13 }
 0x50d   :  { %v3224_v18 = vadd.f32 %v565_v15, %v564_v17 }
 0x50f   :  { %668 = vrot.lane.b32.xlu1 %v3224_v18, %s2943_s6 }
 0x512   :  { %v662_v21 = vpop.permute.xlu0 %661 }
 0x513   :  { %v664_v24 = vmul.f32 %v662_v21, %v659_v19 }
 0x515   :  { %v3229_v26 = vadd.f32 %v665_v23, %v664_v24 }
 0x517   :  { %674 = vrot.lane.b32.xlu0 %v3229_v26, %s2943_s6 }
 0x581   :  { %v669_v40 = vpop.permute.xlu1 %668 }
 0x582   :  { %672 = vst.msk [vmem:[#allocation2 + $0x8] sm:$0xff] %vm243_vm2, %v669_v40  ;;  %2497 = vmatmul.mubr.msk.f32.vlgmr.msra.gmra.mrb[8].mxu0 %vm243_vm2, %v669_v40 }
 0x583   :  { %2702 = vmatpush3.bf16.msra.mxu0 %v3044_v10  ;;  %2518 = vmatprep.mubr.msk.f32.mxu0 %vm2940_vm1, %v2938_v5 }
 0x584   :  { %2703 = vmatprep.subr.bf16.mxu0 %v2939_v11 }
 0x587   :  { %2705 = vmatpush3.bf16.msra.mxu0 %v3064_v16 }
 0x588   :  { %2712 = vmatprep.subr.bf16.mxu0 %v2939_v11 }
 0x589   :  { %v675_v36 = vpop.permute.xlu0 %674 }
 0x58a   :  { %678 = vst.msk [vmem:[#allocation3 + $0x30] sm:$0xff] %vm243_vm2, %v675_v36  ;;  %2508 = vmatmul.mubr.msk.f32.vlgmr.msra.gmra.mrb[16].mxu1 %vm243_vm2, %v675_v36 }
 0x58b   :  { %2708 = vmatpush3.bf16.msra.mxu1 %v3098_v22  ;;  %2529 = vmatprep.mubr.msk.f32.mxu1 %vm2940_vm1, %v2938_v5 }
 0x58c   :  { %2709 = vmatprep.subr.bf16.mxu1 %v2939_v11 }
 0x58f   :  { %2711 = vmatpush3.bf16.msra.mxu1 %v3109_v25 }
 0x590   :  { %2718 = vmatprep.subr.bf16.mxu1 %v2939_v11 }
 0x655   :  { %v749_v43 = vpop.f32.mrb[8].mxu0 }
 0x656   :  { %v750_v44 = vadd.f32 %v3145_v37, %v749_v43  ;;  %v2498_v45 = vpop.f32.mrb[9].mxu0 }
 0x657   :  { %v180_v45 = vadd.f32 %v3235_v20, %v3159_v49 }
 0x658   :  { %761 = vrot.lane.b32.xlu1 %v750_v44, %s2941_s15  ;;  %v753_v51 = vadd.f32 %v750_v44, %v174_v50 }
 0x65a   :  { %v2300_v52 = vmul.f32 -1.442695, %v753_v51 }
 0x65c   :  { %2818 = vpow2.f32 %v2300_v52 }
 0x65d   :  { %v849_v46 = vpop.f32.mrb[16].mxu1 }
 0x65e   :  { %v850_v47 = vadd.f32 %v3152_v41, %v849_v46  ;;  %v2509_v48 = vpop.f32.mrb[17].mxu1 }
 0x65f   :  { %v188_v48 = vadd.f32 %v3128_v29, %v3162_v53 }
 0x660   :  { %861 = vrot.lane.b32.xlu0 %v850_v47, %s2941_s15  ;;  %v853_v55 = vadd.f32 %v850_v47, %v194_v54 }
 0x662   :  { %v2302_v56 = vmul.f32 -1.442695, %v853_v55 }
 0x664   :  { %2820 = vpow2.f32 %v2302_v56 }
 0x666   :  { %v2819_v57 = vpop.eup %2818 }
 0x667   :  { %v757_v58 = vadd.f32 1.0, %v2819_v57 }
 0x669   :  { %2822 = vrcp.f32 %v757_v58 }
 0x66e   :  { %v2821_v59 = vpop.eup %2820 }
 0x66f   :  { %v857_v60 = vadd.f32 1.0, %v2821_v59 }
 0x671   :  { %2824 = vrcp.f32 %v857_v60 }
 0x673   :  { %v2823_v61 = vpop.eup %2822 }
 0x674   :  { %v771_v8 = vsub.f32 1.0, %v2823_v61  ;;  %v777_v12 = vmul.f32 %v2823_v61, %v3224_v18 }
 0x67b   :  { %v2825_v0 = vpop.eup %2824 }
 0x67c   :  { %v871_v15 = vsub.f32 1.0, %v2825_v0  ;;  %v877_v19 = vmul.f32 %v2825_v0, %v3229_v26 }
 0x6ca   :  { %v762_v62 = vpop.permute.xlu1 %761 }
 0x6cb   :  { %v764_v63 = vmul.f32 %v2823_v61, %v762_v62 }
 0x6cd   :  { %766 = vrot.lane.b32.xlu1 %v764_v63, %s2941_s15 }
 0x6d2   :  { %v862_v1 = vpop.permute.xlu0 %861 }
 0x6d3   :  { %v864_v2 = vmul.f32 %v2825_v0, %v862_v1 }
 0x6d5   :  { %866 = vrot.lane.b32.xlu0 %v864_v2, %s2941_s15 }
 0x73f   :  { %v767_v32 = vpop.permute.xlu1 %766 }
 0x740   :  { %v769_v34 = vadd.f32 %v767_v32, %v174_v50 }
 0x742   :  { %2826 = vtanh.f32 %v769_v34 }
 0x747   :  { %v867_v3 = vpop.permute.xlu0 %866 }
 0x748   :  { %v869_v4 = vadd.f32 %v867_v3, %v194_v54 }
 0x74a   :  { %2828 = vtanh.f32 %v869_v4 }
 0x74c   :  { %v2827_v6 = vpop.eup %2826 }
 0x74d   :  { %773 = vrot.lane.b32.xlu1 %v2827_v6, %s2943_s6 }
 0x754   :  { %v2829_v7 = vpop.eup %2828 }
 0x755   :  { %873 = vrot.lane.b32.xlu0 %v2829_v7, %s2943_s6 }
 0x7bf   :  { %v774_v9 = vpop.permute.xlu1 %773 }
 0x7c0   :  { %v776_v13 = vmul.f32 %v774_v9, %v771_v8 }
 0x7c2   :  { %v3267_v14 = vadd.f32 %v777_v12, %v776_v13 }
 0x7c4   :  { %880 = vrot.lane.b32.xlu1 %v3267_v14, %s2943_s6 }
 0x7c7   :  { %v874_v17 = vpop.permute.xlu0 %873 }
 0x7c8   :  { %v876_v21 = vmul.f32 %v874_v17, %v871_v15 }
 0x7ca   :  { %v3272_v23 = vadd.f32 %v877_v19, %v876_v21 }
 0x7cc   :  { %886 = vrot.lane.b32.xlu0 %v3272_v23, %s2943_s6 }
 0x836   :  { %v881_v24 = vpop.permute.xlu1 %880 }
 0x837   :  { %884 = vst.msk [vmem:[#allocation2 + $0x10] sm:$0xff] %vm243_vm2, %v881_v24  ;;  %2519 = vmatmul.mubr.msk.f32.vlgmr.msra.gmra.mrb[10].mxu0 %vm243_vm2, %v881_v24 }
 0x838   :  { %2714 = vmatpush3.bf16.msra.mxu0 %v3044_v10  ;;  %2540 = vmatprep.mubr.msk.f32.mxu0 %vm2940_vm1, %v2938_v5 }
 0x839   :  { %2715 = vmatprep.subr.bf16.mxu0 %v2939_v11 }
 0x83c   :  { %2717 = vmatpush3.bf16.msra.mxu0 %v3064_v16 }
 0x83d   :  { %2724 = vmatprep.subr.bf16.mxu0 %v2939_v11 }
 0x83e   :  { %v887_v18 = vpop.permute.xlu0 %886 }
 0x83f   :  { %890 = vst.msk [vmem:[#allocation3 + $0x28] sm:$0xff] %vm243_vm2, %v887_v18  ;;  %2530 = vmatmul.mubr.msk.f32.vlgmr.msra.gmra.mrb[18].mxu1 %vm243_vm2, %v887_v18 }
 0x840   :  { %2720 = vmatpush3.bf16.msra.mxu1 %v3098_v22  ;;  %2551 = vmatprep.mubr.msk.f32.mxu1 %vm2940_vm1, %v2938_v5 }
 0x841   :  { %2721 = vmatprep.subr.bf16.mxu1 %v2939_v11 }
 0x844   :  { %2723 = vmatpush3.bf16.msra.mxu1 %v3109_v25 }
 0x845   :  { %2730 = vmatprep.subr.bf16.mxu1 %v2939_v11 }
 0x90a   :  { %v961_v26 = vpop.f32.mrb[10].mxu0 }
 0x90b   :  { %v962_v28 = vadd.f32 %v3145_v37, %v961_v26  ;;  %v2520_v40 = vpop.f32.mrb[11].mxu0  ;;  %v186_v26 = vadd.f32 %v3126_v27, %v3159_v49 }
 0x90d   :  { %973 = vrot.lane.b32.xlu1 %v962_v28, %s2941_s15  ;;  %v965_v46 = vadd.f32 %v962_v28, %v180_v45 }
 0x90f   :  { %v2304_v47 = vmul.f32 -1.442695, %v965_v46 }
 0x911   :  { %2830 = vpow2.f32 %v2304_v47 }
 0x912   :  { %v1061_v36 = vpop.f32.mrb[18].mxu1 }
 0x913   :  { %v1062_v43 = vadd.f32 %v3152_v41, %v1061_v36  ;;  %v2531_v44 = vpop.f32.mrb[19].mxu1  ;;  %v182_v36 = vadd.f32 %v3237_v39, %v3162_v53 }
 0x915   :  { %1073 = vrot.lane.b32.xlu0 %v1062_v43, %s2941_s15  ;;  %v1065_v50 = vadd.f32 %v1062_v43, %v188_v48 }
 0x917   :  { %v2306_v51 = vmul.f32 -1.442695, %v1065_v50 }
 0x919   :  { %2832 = vpow2.f32 %v2306_v51 }
 0x91b   :  { %v2831_v52 = vpop.eup %2830 }
 0x91c   :  { %v969_v54 = vadd.f32 1.0, %v2831_v52 }
 0x91e   :  { %2834 = vrcp.f32 %v969_v54 }
 0x923   :  { %v2833_v55 = vpop.eup %2832 }
 0x924   :  { %v1069_v56 = vadd.f32 1.0, %v2833_v55 }
 0x926   :  { %2836 = vrcp.f32 %v1069_v56 }
 0x928   :  { %v2835_v57 = vpop.eup %2834 }
 0x929   :  { %v983_v32 = vsub.f32 1.0, %v2835_v57  ;;  %v989_v3 = vmul.f32 %v2835_v57, %v3267_v14 }
 0x930   :  { %v2837_v20 = vpop.eup %2836 }
 0x931   :  { %v1083_v7 = vsub.f32 1.0, %v2837_v20  ;;  %v1089_v9 = vmul.f32 %v2837_v20, %v3272_v23 }
 0x97f   :  { %v974_v58 = vpop.permute.xlu1 %973 }
 0x980   :  { %v976_v59 = vmul.f32 %v2835_v57, %v974_v58 }
 0x982   :  { %978 = vrot.lane.b32.xlu1 %v976_v59, %s2941_s15 }
 0x987   :  { %v1074_v60 = vpop.permute.xlu0 %1073 }
 0x988   :  { %v1076_v61 = vmul.f32 %v2837_v20, %v1074_v60 }
 0x98a   :  { %1078 = vrot.lane.b32.xlu0 %v1076_v61, %s2941_s15 }
 0x9f4   :  { %v979_v29 = vpop.permute.xlu1 %978 }
 0x9f5   :  { %v981_v62 = vadd.f32 %v979_v29, %v180_v45 }
 0x9f7   :  { %2838 = vtanh.f32 %v981_v62 }
 0x9fc   :  { %v1079_v63 = vpop.permute.xlu0 %1078 }
 0x9fd   :  { %v1081_v0 = vadd.f32 %v1079_v63, %v188_v48 }
 0x9ff   :  { %2840 = vtanh.f32 %v1081_v0 }
 0xa01   :  { %v2839_v1 = vpop.eup %2838 }
 0xa02   :  { %985 = vrot.lane.b32.xlu1 %v2839_v1, %s2943_s6 }
 0xa09   :  { %v2841_v2 = vpop.eup %2840 }
 0xa0a   :  { %1085 = vrot.lane.b32.xlu0 %v2841_v2, %s2943_s6 }
 0xa74   :  { %v986_v34 = vpop.permute.xlu1 %985 }
 0xa75   :  { %v988_v4 = vmul.f32 %v986_v34, %v983_v32 }
 0xa77   :  { %v3305_v6 = vadd.f32 %v989_v3, %v988_v4 }
 0xa79   :  { %1092 = vrot.lane.b32.xlu1 %v3305_v6, %s2943_s6 }
 0xa7c   :  { %v1086_v8 = vpop.permute.xlu0 %1085 }
 0xa7d   :  { %v1088_v12 = vmul.f32 %v1086_v8, %v1083_v7 }
 0xa7f   :  { %v3310_v13 = vadd.f32 %v1089_v9, %v1088_v12 }
 0xa81   :  { %1098 = vrot.lane.b32.xlu0 %v3310_v13, %s2943_s6 }
 0xaeb   :  { %v1093_v15 = vpop.permute.xlu1 %1092 }
 0xaec   :  { %1096 = vst.msk [vmem:[#allocation2 + $0x18] sm:$0xff] %vm243_vm2, %v1093_v15  ;;  %2541 = vmatmul.mubr.msk.f32.vlgmr.msra.gmra.mrb[12].mxu0 %vm243_vm2, %v1093_v15  ;;  %v192_v15 = vadd.f32 %v3132_v31, %v3159_v49 }
 0xaed   :  { %2726 = vmatpush3.bf16.msra.mxu0 %v3044_v10  ;;  %2562 = vmatprep.mubr.msk.f32.mxu0 %vm2940_vm1, %v2938_v5 }
 0xaee   :  { %2727 = vmatprep.subr.bf16.mxu0 %v2939_v11 }
 0xaf1   :  { %2729 = vmatpush3.bf16.msra.mxu0 %v3064_v16 }
 0xaf2   :  { %2736 = vmatprep.subr.bf16.mxu0 %v2939_v11 }
 0xaf3   :  { %v1099_v14 = vpop.permute.xlu0 %1098 }
 0xaf4   :  { %1102 = vst.msk [vmem:[#allocation3 + $0x20] sm:$0xff] %vm243_vm2, %v1099_v14  ;;  %2552 = vmatmul.mubr.msk.f32.vlgmr.msra.gmra.mrb[20].mxu1 %vm243_vm2, %v1099_v14 }
 0xaf5   :  { %2732 = vmatpush3.bf16.msra.mxu1 %v3098_v22  ;;  %2573 = vmatprep.mubr.msk.f32.mxu1 %vm2940_vm1, %v2938_v5 }
 0xaf6   :  { %2733 = vmatprep.subr.bf16.mxu1 %v2939_v11 }
 0xaf9   :  { %2735 = vmatpush3.bf16.msra.mxu1 %v3109_v25 }
 0xafa   :  { %2742 = vmatprep.subr.bf16.mxu1 %v2939_v11 }
 0xbbf   :  { %v1172_v17 = vpop.f32.mrb[12].mxu0 }
 0xbc0   :  { %v1173_v19 = vadd.f32 %v3145_v37, %v1172_v17  ;;  %v2542_v21 = vpop.f32.mrb[13].mxu0 }
 0xbc2   :  { %1184 = vrot.lane.b32.xlu1 %v1173_v19, %s2941_s15  ;;  %v1176_v28 = vadd.f32 %v1173_v19, %v186_v26  ;;  %v176_v19 = vadd.f32 %v3233_v38, %v3162_v53 }
 0xbc4   :  { %v2308_v40 = vmul.f32 -1.442695, %v1176_v28 }
 0xbc6   :  { %2842 = vpow2.f32 %v2308_v40 }
 0xbc7   :  { %v1271_v23 = vpop.f32.mrb[20].mxu1 }
 0xbc8   :  { %v1272_v24 = vadd.f32 %v3152_v41, %v1271_v23  ;;  %v2553_v18 = vpop.f32.mrb[21].mxu1 }
 0xbca   :  { %1283 = vrot.lane.b32.xlu0 %v1272_v24, %s2941_s15  ;;  %v1275_v43 = vadd.f32 %v1272_v24, %v182_v36 }
 0xbcc   :  { %v2310_v44 = vmul.f32 -1.442695, %v1275_v43 }
 0xbce   :  { %2844 = vpow2.f32 %v2310_v44 }
 0xbd0   :  { %v2843_v45 = vpop.eup %2842 }
 0xbd1   :  { %v1180_v46 = vadd.f32 1.0, %v2843_v45 }
 0xbd3   :  { %2846 = vrcp.f32 %v1180_v46 }
 0xbd8   :  { %v2845_v47 = vpop.eup %2844 }
 0xbd9   :  { %v1279_v48 = vadd.f32 1.0, %v2845_v47 }
 0xbdb   :  { %2848 = vrcp.f32 %v1279_v48 }
 0xbdd   :  { %v2847_v50 = vpop.eup %2846 }
 0xbde   :  { %v1194_v60 = vsub.f32 1.0, %v2847_v50  ;;  %v1200_v29 = vmul.f32 %v2847_v50, %v3305_v6 }
 0xbe5   :  { %v2849_v27 = vpop.eup %2848 }
 0xbe6   :  { %v1293_v0 = vsub.f32 1.0, %v2849_v27  ;;  %v1299_v2 = vmul.f32 %v2849_v27, %v3310_v13 }
 0xc34   :  { %v1185_v51 = vpop.permute.xlu1 %1184 }
 0xc35   :  { %v1187_v52 = vmul.f32 %v2847_v50, %v1185_v51 }
 0xc37   :  { %1189 = vrot.lane.b32.xlu1 %v1187_v52, %s2941_s15 }
 0xc3c   :  { %v1284_v54 = vpop.permute.xlu0 %1283 }
 0xc3d   :  { %v1286_v55 = vmul.f32 %v2849_v27, %v1284_v54 }
 0xc3f   :  { %1288 = vrot.lane.b32.xlu0 %v1286_v55, %s2941_s15 }
 0xca9   :  { %v1190_v39 = vpop.permute.xlu1 %1189 }
 0xcaa   :  { %v1192_v56 = vadd.f32 %v1190_v39, %v186_v26 }
 0xcac   :  { %2850 = vtanh.f32 %v1192_v56 }
 0xcb1   :  { %v1289_v57 = vpop.permute.xlu0 %1288 }
 0xcb2   :  { %v1291_v58 = vadd.f32 %v1289_v57, %v182_v36 }
 0xcb4   :  { %2852 = vtanh.f32 %v1291_v58 }
 0xcb6   :  { %v2851_v59 = vpop.eup %2850 }
 0xcb7   :  { %1196 = vrot.lane.b32.xlu1 %v2851_v59, %s2943_s6 }
 0xcbe   :  { %v2853_v20 = vpop.eup %2852 }
 0xcbf   :  { %1295 = vrot.lane.b32.xlu0 %v2853_v20, %s2943_s6 }
 0xd29   :  { %v1197_v61 = vpop.permute.xlu1 %1196 }
 0xd2a   :  { %v1199_v62 = vmul.f32 %v1197_v61, %v1194_v60 }
 0xd2c   :  { %v3343_v63 = vadd.f32 %v1200_v29, %v1199_v62 }
 0xd2e   :  { %1302 = vrot.lane.b32.xlu1 %v3343_v63, %s2943_s6 }
 0xd31   :  { %v1296_v1 = vpop.permute.xlu0 %1295 }
 0xd32   :  { %v1298_v32 = vmul.f32 %v1296_v1, %v1293_v0 }
 0xd34   :  { %v3348_v34 = vadd.f32 %v1299_v2, %v1298_v32 }
 0xd36   :  { %1308 = vrot.lane.b32.xlu0 %v3348_v34, %s2943_s6 }
 0xda0   :  { %v1303_v3 = vpop.permute.xlu1 %1302 }
 0xda1   :  { %1306 = vst.msk [vmem:[#allocation2 + $0x20] sm:$0xff] %vm243_vm2, %v1303_v3  ;;  %2563 = vmatmul.mubr.msk.f32.vlgmr.msra.gmra.mrb[14].mxu0 %vm243_vm2, %v1303_v3 }
 0xda2   :  { %2738 = vmatpush3.bf16.msra.mxu0 %v3044_v10  ;;  %2584 = vmatprep.mubr.msk.f32.mxu0 %vm2940_vm1, %v2938_v5 }
 0xda3   :  { %2739 = vmatprep.subr.bf16.mxu0 %v2939_v11 }
 0xda6   :  { %2741 = vmatpush3.bf16.msra.mxu0 %v3064_v16 }
 0xda7   :  { %2748 = vmatprep.subr.bf16.mxu0 %v2939_v11 }
 0xda8   :  { %v1309_v4 = vpop.permute.xlu0 %1308 }
 0xda9   :  { %1312 = vst.msk [vmem:[#allocation3 + $0x18] sm:$0xff] %vm243_vm2, %v1309_v4  ;;  %2574 = vmatmul.mubr.msk.f32.vlgmr.msra.gmra.mrb[22].mxu1 %vm243_vm2, %v1309_v4 }
 0xdaa   :  { %2744 = vmatpush3.bf16.msra.mxu1 %v3098_v22  ;;  %2595 = vmatprep.mubr.msk.f32.mxu1 %vm2940_vm1, %v2938_v5 }
 0xdab   :  { %2745 = vmatprep.subr.bf16.mxu1 %v2939_v11 }
 0xdae   :  { %2747 = vmatpush3.bf16.msra.mxu1 %v3109_v25 }
 0xdaf   :  { %2754 = vmatprep.subr.bf16.mxu1 %v2939_v11 }
 0xe74   :  { %v1382_v6 = vpop.f32.mrb[14].mxu0 }
 0xe75   :  { %v1383_v7 = vadd.f32 %v3145_v37, %v1382_v6  ;;  %v2564_v8 = vpop.f32.mrb[15].mxu0 }
 0xe77   :  { %1394 = vrot.lane.b32.xlu1 %v1383_v7, %s2941_s15  ;;  %v1386_v14 = vadd.f32 %v1383_v7, %v192_v15 }
 0xe79   :  { %v2312_v17 = vmul.f32 -1.442695, %v1386_v14 }
 0xe7b   :  { %2854 = vpow2.f32 %v2312_v17 }
 0xe7c   :  { %v1481_v9 = vpop.f32.mrb[22].mxu1 }
 0xe7d   :  { %v1482_v12 = vadd.f32 %v3152_v41, %v1481_v9  ;;  %v2575_v13 = vpop.f32.mrb[23].mxu1 }
 0xe7f   :  { %1493 = vrot.lane.b32.xlu0 %v1482_v12, %s2941_s15  ;;  %v1485_v21 = vadd.f32 %v1482_v12, %v176_v19 }
 0xe81   :  { %v2314_v23 = vmul.f32 -1.442695, %v1485_v21 }
 0xe83   :  { %2856 = vpow2.f32 %v2314_v23 }
 0xe85   :  { %v2855_v24 = vpop.eup %2854 }
 0xe86   :  { %v1390_v18 = vadd.f32 1.0, %v2855_v24 }
 0xe88   :  { %2858 = vrcp.f32 %v1390_v18 }
 0xe8d   :  { %v2857_v26 = vpop.eup %2856 }
 0xe8e   :  { %v1489_v28 = vadd.f32 1.0, %v2857_v26 }
 0xe90   :  { %2860 = vrcp.f32 %v1489_v28 }
 0xe92   :  { %v2859_v40 = vpop.eup %2858 }
 0xe93   :  { %v1404_v52 = vsub.f32 1.0, %v2859_v40  ;;  %v1410_v54 = vmul.f32 %v2859_v40, %v3343_v63 }
 0xe9a   :  { %v2861_v31 = vpop.eup %2860 }
 0xe9b   :  { %v1503_v56 = vsub.f32 1.0, %v2861_v31  ;;  %v1509_v58 = vmul.f32 %v2861_v31, %v3348_v34 }
 0xee9   :  { %v1395_v36 = vpop.permute.xlu1 %1394 }
 0xeea   :  { %v1397_v43 = vmul.f32 %v2859_v40, %v1395_v36 }
 0xeec   :  { %1399 = vrot.lane.b32.xlu1 %v1397_v43, %s2941_s15 }
 0xef1   :  { %v1494_v44 = vpop.permute.xlu0 %1493 }
 0xef2   :  { %v1496_v45 = vmul.f32 %v2861_v31, %v1494_v44 }
 0xef4   :  { %1498 = vrot.lane.b32.xlu0 %v1496_v45, %s2941_s15 }
 0xf5e   :  { %v1400_v38 = vpop.permute.xlu1 %1399 }
 0xf5f   :  { %v1402_v46 = vadd.f32 %v1400_v38, %v192_v15 }
 0xf61   :  { %2862 = vtanh.f32 %v1402_v46 }
 0xf66   :  { %v1499_v47 = vpop.permute.xlu0 %1498 }
 0xf67   :  { %v1501_v48 = vadd.f32 %v1499_v47, %v176_v19 }
 0xf69   :  { %2864 = vtanh.f32 %v1501_v48 }
 0xf6b   :  { %v2863_v50 = vpop.eup %2862 }
 0xf6c   :  { %1406 = vrot.lane.b32.xlu1 %v2863_v50, %s2943_s6 }
 0xf73   :  { %v2865_v51 = vpop.eup %2864 }
 0xf74   :  { %1505 = vrot.lane.b32.xlu0 %v2865_v51, %s2943_s6 }
 0xfde   :  { %v1407_v27 = vpop.permute.xlu1 %1406 }
 0xfdf   :  { %v1409_v55 = vmul.f32 %v1407_v27, %v1404_v52  ;;  %v204_v52 = vadd.f32 %v3140_v35, %v3159_v49 }
 0xfe1   :  { %v3381_v39 = vadd.f32 %v1410_v54, %v1409_v55  ;;  %v164_v55 = vadd.f32 %v3130_v30, %v3162_v53 }
 0xfe3   :  { %1512 = vrot.lane.b32.xlu1 %v3381_v39, %s2943_s6 }
 0xfe6   :  { %v1506_v57 = vpop.permute.xlu0 %1505 }
 0xfe7   :  { %v1508_v59 = vmul.f32 %v1506_v57, %v1503_v56 }
 0xfe9   :  { %v3386_v20 = vadd.f32 %v1509_v58, %v1508_v59 }
 0xfeb   :  { %1518 = vrot.lane.b32.xlu0 %v3386_v20, %s2943_s6 }
0x1055   :  { %v1513_v60 = vpop.permute.xlu1 %1512 }
0x1056   :  { %1516 = vst.msk [vmem:[#allocation2 + $0x28] sm:$0xff] %vm243_vm2, %v1513_v60  ;;  %2585 = vmatmul.mubr.msk.f32.vlgmr.msra.gmra.mrb[16].mxu0 %vm243_vm2, %v1513_v60 }
0x1057   :  { %2750 = vmatpush3.bf16.msra.mxu0 %v3044_v10  ;;  %2606 = vmatprep.mubr.msk.f32.mxu0 %vm2940_vm1, %v2938_v5 }
0x1058   :  { %2751 = vmatprep.subr.bf16.mxu0 %v2939_v11 }
0x105b   :  { %2753 = vmatpush3.bf16.msra.mxu0 %v3064_v16 }
0x105d   :  { %v1519_v61 = vpop.permute.xlu0 %1518 }
0x105e   :  { %1522 = vst.msk [vmem:[#allocation3 + $0x10] sm:$0xff] %vm243_vm2, %v1519_v61  ;;  %2596 = vmatmul.mubr.msk.f32.vlgmr.msra.gmra.mrb[24].mxu1 %vm243_vm2, %v1519_v61 }
0x105f   :  { %2756 = vmatpush3.bf16.msra.mxu1 %v3098_v22  ;;  %2617 = vmatprep.mubr.msk.f32.mxu1 %vm2940_vm1, %v2938_v5  ;;  %v198_v22 = vadd.f32 %v3136_v33, %v3159_v49 }
0x1060   :  { %2757 = vmatprep.subr.bf16.mxu1 %v2939_v11  ;;  %v170_v11 = vadd.f32 %v3199_v42, %v3162_v53 }
0x1063   :  { %2759 = vmatpush3.bf16.msra.mxu1 %v3109_v25 }
0x1129   :  { %v1592_v10 = vpop.f32.mrb[16].mxu0 }
0x112a   :  { %v1593_v29 = vadd.f32 %v3145_v37, %v1592_v10  ;;  %v2586_v62 = vpop.f32.mrb[17].mxu0 }
0x112c   :  { %1604 = vrot.lane.b32.xlu1 %v1593_v29, %s2941_s15  ;;  %v1596_v5 = vadd.f32 %v1593_v29, %v198_v22 }
0x112e   :  { %v2316_v1 = vmul.f32 -1.442695, %v1596_v5 }
0x1130   :  { %2866 = vpow2.f32 %v2316_v1 }
0x1131   :  { %v1691_v16 = vpop.f32.mrb[24].mxu1 }
0x1132   :  { %v1692_v63 = vadd.f32 %v3152_v41, %v1691_v16  ;;  %v2597_v0 = vpop.f32.mrb[25].mxu1 }
0x1133   :  { %v1965_v0 = vld [vmem:[%s3545_s8 + $0x8] sm:$0xff] }
0x1134   :  { %1703 = vrot.lane.b32.xlu0 %v1692_v63, %s2941_s15  ;;  %v1695_v25 = vadd.f32 %v1692_v63, %v170_v11  ;;  %v1964_v63 = vld [vmem:[%s3545_s8] sm:$0xff] }
0x1135   :  { %v2760_v5 = vpack.c.bf16 %v1965_v0, %v1964_v63 }
0x1136   :  { %v2318_v2 = vmul.f32 -1.442695, %v1695_v25  ;;  %v1967_v25 = vld [vmem:[%s3545_s8 + $0x18] sm:$0xff] }
0x1137   :  { %2761 = vmatprep.subr.bf16.mxu0 %v2760_v5 }
0x1138   :  { %2868 = vpow2.f32 %v2318_v2 }
0x113a   :  { %v2867_v32 = vpop.eup %2866 }
0x113b   :  { %v1600_v34 = vadd.f32 1.0, %v2867_v32 }
0x113d   :  { %2870 = vrcp.f32 %v1600_v34 }
0x1142   :  { %v2869_v3 = vpop.eup %2868 }
0x1143   :  { %v1699_v4 = vadd.f32 1.0, %v2869_v3 }
0x1145   :  { %2872 = vrcp.f32 %v1699_v4 }
0x1147   :  { %v2871_v6 = vpop.eup %2870 }
0x1148   :  { %v1614_v21 = vsub.f32 1.0, %v2871_v6  ;;  %v1620_v24 = vmul.f32 %v2871_v6, %v3381_v39 }
0x114f   :  { %v2873_v33 = vpop.eup %2872 }
0x1150   :  { %v1713_v28 = vsub.f32 1.0, %v2873_v33  ;;  %v1719_v36 = vmul.f32 %v2873_v33, %v3386_v20 }
0x119e   :  { %v1605_v7 = vpop.permute.xlu1 %1604 }
0x119f   :  { %v1607_v8 = vmul.f32 %v2871_v6, %v1605_v7 }
0x11a1   :  { %1609 = vrot.lane.b32.xlu1 %v1607_v8, %s2941_s15 }
0x11a6   :  { %v1704_v9 = vpop.permute.xlu0 %1703 }
0x11a7   :  { %v1706_v12 = vmul.f32 %v2873_v33, %v1704_v9  ;;  %v1960_v33 = vld [vmem:[%s3544_s7] sm:$0xff]  ;;  %v1961_v9 = vld [vmem:[%s3544_s7 + $0x8] sm:$0xff] }
0x11a9   :  { %1708 = vrot.lane.b32.xlu0 %v1706_v12, %s2941_s15  ;;  %v2768_v12 = vpack.c.bf16 %v1961_v9, %v1960_v33 }
0x1213   :  { %v1610_v42 = vpop.permute.xlu1 %1609 }
0x1214   :  { %v1612_v13 = vadd.f32 %v1610_v42, %v198_v22 }
0x1216   :  { %2874 = vtanh.f32 %v1612_v13 }
0x121b   :  { %v1709_v15 = vpop.permute.xlu0 %1708 }
0x121c   :  { %v1711_v14 = vadd.f32 %v1709_v15, %v170_v11  ;;  %v1966_v11 = vld [vmem:[%s3545_s8 + $0x10] sm:$0xff] }
0x121d   :  { %v2764_v34 = vpack.c.bf16 %v1967_v25, %v1966_v11 }
0x121e   :  { %2876 = vtanh.f32 %v1711_v14  ;;  %v1962_v14 = vld [vmem:[%s3544_s7 + $0x10] sm:$0xff] }
0x1220   :  { %v2875_v17 = vpop.eup %2874 }
0x1221   :  { %1616 = vrot.lane.b32.xlu1 %v2875_v17, %s2943_s6  ;;  %v1963_v17 = vld [vmem:[%s3544_s7 + $0x18] sm:$0xff]  ;;  %s2944_s7 = smov [#allocation5]  }
0x1222   :  { %s2255_s4 = sshll.u32 %s2944_s7, 4  ;;  %s2256_s4 = int_to_ptr.vmem [resolvable:$true] %s2255_s4 }
0x1223   :  { %p2895_p1 = scmp.lt.s32.totalorder %s2256_s4, %s2256_s4 }
0x1228   :  { %v2877_v19 = vpop.eup %2876 }
0x1229   :  { %1715 = vrot.lane.b32.xlu0 %v2877_v19, %s2943_s6 }
0x1293   :  { %v1617_v23 = vpop.permute.xlu1 %1616 }
0x1294   :  { %v1619_v18 = vmul.f32 %v1617_v23, %v1614_v21  ;;  %v2772_v21 = vpack.c.bf16 %v1963_v17, %v1962_v14 }
0x1296   :  { %v1621_v26 = vadd.f32 %v1620_v24, %v1619_v18  ;;  %v1954_v24 = vld [vmem:[#allocation3 + $0x10] sm:$0xff]  ;;  %v1955_v18 = vld [vmem:[#allocation3 + $0x18] sm:$0xff] }
0x1298   :  { %1722 = vrot.lane.b32.xlu1 %v1621_v26, %s2943_s6 }
0x129b   :  { %v1716_v40 = vpop.permute.xlu0 %1715 }
0x129c   :  { %v1718_v43 = vmul.f32 %v1716_v40, %v1713_v28  ;;  %v1957_v28 = vld [vmem:[#allocation3 + $0x28] sm:$0xff]  ;;  %v1958_v40 = vld [vmem:[#allocation3 + $0x30] sm:$0xff] }
0x129e   :  { %v3419_v31 = vadd.f32 %v1719_v36, %v1718_v43  ;;  %v1959_v36 = vld [vmem:[#allocation3 + $0x38] sm:$0xff]  ;;  %v1944_v43 = vld [vmem:[#allocation2] sm:$0xff] }
0x12a0   :  { %1728 = vrot.lane.b32.xlu0 %v3419_v31, %s2943_s6 }
0x130a   :  { %v1723_v44 = vpop.permute.xlu1 %1722 }
0x130b   :  { %1726 = vst.msk [vmem:[#allocation2 + $0x30] sm:$0xff] %vm243_vm2, %v1723_v44  ;;  %2607 = vmatmul.mubr.msk.f32.vlgmr.msra.gmra.mrb[18].mxu0 %vm243_vm2, %v1723_v44  ;;  %v1946_v44 = vld [vmem:[#allocation2 + $0x10] sm:$0xff] }
0x130c   :  { %2763 = vmatpush3.bf16.msra.mxu0 %v2760_v5 }
0x130d   :  { %2765 = vmatprep.subr.bf16.mxu0 %v2764_v34 }
0x1310   :  { %2767 = vmatpush3.bf16.msra.mxu0 %v2764_v34 }
0x1311   :  { %2769 = vmatprep.subr.bf16.mxu0 %v2768_v12 }
0x1312   :  { %v1729_v45 = vpop.permute.xlu0 %1728 }
0x1313   :  { %1732 = vst.msk [vmem:[#allocation3 + $0x8] sm:$0xff] %vm243_vm2, %v1729_v45  ;;  %2618 = vmatmul.mubr.msk.f32.vlgmr.msra.gmra.mrb[26].mxu1 %vm243_vm2, %v1729_v45  ;;  %v1947_v45 = vld [vmem:[#allocation2 + $0x18] sm:$0xff] }
0x131a   :  { %v1953_v23 = vld [vmem:[#allocation3 + $0x8] sm:$0xff] }
0x13de   :  { %v1802_v38 = vpop.f32.mrb[18].mxu0 }
0x13df   :  { %v1803_v46 = vadd.f32 %v3145_v37, %v1802_v38  ;;  %v2608_v47 = vpop.f32.mrb[19].mxu0  ;;  %v1948_v38 = vld [vmem:[#allocation2 + $0x20] sm:$0xff] }
0x13e0   :  { %v1950_v47 = vld [vmem:[#allocation2 + $0x30] sm:$0xff] }
0x13e1   :  { %1814 = vrot.lane.b32.xlu1 %v1803_v46, %s2941_s15  ;;  %v1806_v27 = vadd.f32 %v1803_v46, %v204_v52  ;;  %v1949_v46 = vld [vmem:[#allocation2 + $0x28] sm:$0xff] }
0x13e3   :  { %v2320_v54 = vmul.f32 -1.442695, %v1806_v27 }
0x13e5   :  { %2878 = vpow2.f32 %v2320_v54 }
0x13e6   :  { %v1901_v48 = vpop.f32.mrb[26].mxu1 }
0x13e7   :  { %v1902_v50 = vadd.f32 %v3152_v41, %v1901_v48  ;;  %v2619_v51 = vpop.f32.mrb[27].mxu1 }
0x13e9   :  { %1913 = vrot.lane.b32.xlu0 %v1902_v50, %s2941_s15  ;;  %v1905_v39 = vadd.f32 %v1902_v50, %v164_v55 }
0x13eb   :  { %v2322_v37 = vmul.f32 -1.442695, %v1905_v39 }
0x13ed   :  { %2880 = vpow2.f32 %v2322_v37 }
0x13ef   :  { %v2879_v56 = vpop.eup %2878 }
0x13f0   :  { %v1810_v57 = vadd.f32 1.0, %v2879_v56 }
0x13f2   :  { %2882 = vrcp.f32 %v1810_v57 }
0x13f7   :  { %v2881_v58 = vpop.eup %2880 }
0x13f8   :  { %v1909_v41 = vadd.f32 1.0, %v2881_v58 }
0x13fa   :  { %2884 = vrcp.f32 %v1909_v41 }
0x13fc   :  { %v2883_v59 = vpop.eup %2882 }
0x13fd   :  { %v1824_v22 = vsub.f32 1.0, %v2883_v59  ;;  %v1830_v2 = vmul.f32 %v2883_v59, %v1621_v26  ;;  %v1956_v26 = vld [vmem:[#allocation3 + $0x20] sm:$0xff] }
0x1404   :  { %v2885_v35 = vpop.eup %2884 }
0x1405   :  { %v1923_v4 = vsub.f32 1.0, %v2885_v35  ;;  %v1929_v7 = vmul.f32 %v2885_v35, %v3419_v31  ;;  %v1945_v31 = vld [vmem:[#allocation2 + $0x8] sm:$0xff] }
0x1453   :  { %v1815_v20 = vpop.permute.xlu1 %1814 }
0x1454   :  { %v1817_v60 = vmul.f32 %v2883_v59, %v1815_v20 }
0x1456   :  { %1819 = vrot.lane.b32.xlu1 %v1817_v60, %s2941_s15 }
0x145b   :  { %v1914_v49 = vpop.permute.xlu0 %1913 }
0x145c   :  { %v1916_v61 = vmul.f32 %v2885_v35, %v1914_v49 }
0x145e   :  { %1918 = vrot.lane.b32.xlu0 %v1916_v61, %s2941_s15 }
0x14c8   :  { %v1820_v30 = vpop.permute.xlu1 %1819 }
0x14c9   :  { %v1822_v53 = vadd.f32 %v1820_v30, %v204_v52 }
0x14cb   :  { %2886 = vtanh.f32 %v1822_v53 }
0x14d0   :  { %v1919_v10 = vpop.permute.xlu0 %1918 }
0x14d1   :  { %v1921_v29 = vadd.f32 %v1919_v10, %v164_v55 }
0x14d3   :  { %2888 = vtanh.f32 %v1921_v29 }
0x14d5   :  { %v2887_v62 = vpop.eup %2886 }
0x14d6   :  { %1826 = vrot.lane.b32.xlu1 %v2887_v62, %s2943_s6 }
0x14dd   :  { %v2889_v16 = vpop.eup %2888 }
0x14de   :  { %1925 = vrot.lane.b32.xlu0 %v2889_v16, %s2943_s6 }
0x1548   :  { %v1827_v1 = vpop.permute.xlu1 %1826 }
0x1549   :  { %v1829_v32 = vmul.f32 %v1827_v1, %v1824_v22 }
0x154b   :  { %v1831_v3 = vadd.f32 %v1830_v2, %v1829_v32 }
0x154d   :  { %1932 = vrot.lane.b32.xlu1 %v1831_v3, %s2943_s6 }
0x1550   :  { %v1926_v6 = vpop.permute.xlu0 %1925 }
0x1551   :  { %v1928_v8 = vmul.f32 %v1926_v6, %v1923_v4 }
0x1553   :  { %v1930_v42 = vadd.f32 %v1929_v7, %v1928_v8 }
0x1555   :  { %1938 = vrot.lane.b32.xlu0 %v1930_v42, %s2943_s6  ;;  %s2890_s6 = scalar_lea.vmem %s2256_s4, 128 }
0x1556   :  { %p2891_p0 = scmp.ne.s32.totalorder %s2256_s4, %s2890_s6  ;;  %p2896_p2 = scmp.lt.s32.totalorder %s2890_s6, %s2890_s6 }
0x1558   :  { %p2897_p3 = por %p2896_p2, %p2895_p1 }
0x155a   :  { %p2898_p4 = pnand %p2897_p3, %p2891_p0 }
0x15bf   :  { %v1933_v13 = vpop.permute.xlu1 %1932 }
0x15c0   :  { %1936 = vst.msk [vmem:[#allocation2 + $0x38] sm:$0xff] %vm243_vm2, %v1933_v13  ;;  %1942 = vst.msk [vmem:[#allocation5] sm:$0xff] %vm243_vm2, %v1933_v13 }
0x15c7   :  { %v1939_v15 = vpop.permute.xlu0 %1938  ;;  %v1951_v48 = vld [vmem:[#allocation2 + $0x38] sm:$0xff] }
0x15c8   :  { %1941 = vst.msk [vmem:[#allocation3] sm:$0xff] %vm243_vm2, %v1939_v15  ;;  %1943 = vst.msk [vmem:[#allocation7] sm:$0xff] %vm243_vm2, %v1939_v15 }
0x15cf   :  { %v1952_v19 = vld [vmem:[#allocation3] sm:$0xff] }
0x15d0   :  { %2628 = vmatprep.mubr.msk.f32.mxu0 %vm243_vm2, %v1952_v19 }
0x15d1   :  { %2629 = vmatmul.mubr.msk.f32.vlgmr.msra.gmra.mrb[20].mxu0 %vm243_vm2, %v1953_v23 }
0x15d2   :  { %2631 = vmatprep.mubr.msk.f32.mxu0 %vm243_vm2, %v1954_v24  ;;  %2771 = vmatpush3.bf16.msra.mxu0 %v2768_v12 }
0x15d3   :  { %2773 = vmatprep.subr.bf16.mxu0 %v2772_v21 }
0x15d5   :  { %2632 = vmatmul.mubr.msk.f32.gmra.mrb[22].mxu0 %vm243_vm2, %v1955_v18 }
0x15d6   :  { %2634 = vmatprep.mubr.msk.f32.mxu0 %vm243_vm2, %v1956_v26  ;;  %2775 = vmatpush3.bf16.msra.mxu0 %v2772_v21 }
0x15d9   :  { %2635 = vmatmul.mubr.msk.f32.gmra.mrb[24].mxu0 %vm243_vm2, %v1957_v28 }
0x15da   :  { %2637 = vmatprep.mubr.msk.f32.mxu0 %vm243_vm2, %v1958_v40 }
0x15dd   :  { %2638 = vmatmul.mubr.msk.f32.gmra.mrb[26].mxu0 %vm243_vm2, %v1959_v36 }
0x15de   :  { %2648 = vmatprep.mubr.msk.f32.mxu0 %vm243_vm2, %v1944_v43 }
0x15e1   :  { %2649 = vmatmul.mubr.msk.f32.vlgmr.msra.gmra.mrb[20].mxu0 %vm243_vm2, %v1945_v31 }
0x15e2   :  { %2651 = vmatprep.mubr.msk.f32.mxu0 %vm243_vm2, %v1946_v44 }
0x15e5   :  { %2652 = vmatmul.mubr.msk.f32.gmra.mrb[22].mxu0 %vm243_vm2, %v1947_v45 }
0x15e6   :  { %2654 = vmatprep.mubr.msk.f32.mxu0 %vm243_vm2, %v1948_v38 }
0x15e9   :  { %2655 = vmatmul.mubr.msk.f32.gmra.mrb[24].mxu0 %vm243_vm2, %v1949_v46 }
0x15ea   :  { %2657 = vmatprep.mubr.msk.f32.mxu0 %vm243_vm2, %v1950_v47 }
0x15ed   :  { %2658 = vmatmul.mubr.msk.f32.gmra.mrb[26].mxu0 %vm243_vm2, %v1951_v48 }
0x15ee   :  { %2901 = shalt.err (!%p2898_p4)
}
0x15ef   :  { %s2902_s20 = scalar_lea.hbm %s3549_s12, 128 }
0x15f0   :  { %p2903_p5 = scmp.ne.s32.totalorder %s3549_s12, %s2902_s20  ;;  %p2906_p6 = scmp.lt.u32.totalorder %s2902_s20, %s3549_s12 }
0x15f2   :  { %p2908_p7 = pnand %p2906_p6, %p2903_p5 }
0x15f4   :  { %2911 = shalt.err (!%p2908_p7)
}
0x15f5   :  { %2258 = dma.vmem_to_hbm [thread:$0]  %s2256_s4, 128, %s3549_s12, [#allocation6]  }
0x15f6   :  { %s2912_s26 = scalar_lea.vmem %s2266_s2, 128  ;;  %p2917_p9 = scmp.lt.s32.totalorder %s2266_s2, %s2266_s2 }
0x15f7   :  { %p2913_p8 = scmp.ne.s32.totalorder %s2266_s2, %s2912_s26  ;;  %p2918_p10 = scmp.lt.s32.totalorder %s2912_s26, %s2912_s26 }
0x15f9   :  { %p2919_p11 = por %p2918_p10, %p2917_p9 }
0x15fb   :  { %p2920_p12 = pnand %p2919_p11, %p2913_p8 }
0x15fd   :  { %2923 = shalt.err (!%p2920_p12)
}
0x15fe   :  { %s2924_s28 = scalar_lea.hbm %s3550_s13, 128 }
0x15ff   :  { %p2925_p13 = scmp.ne.s32.totalorder %s3550_s13, %s2924_s28  ;;  %p2928_p0 = scmp.lt.u32.totalorder %s2924_s28, %s3550_s13 }
0x1601   :  { %p2930_p1 = pnand %p2928_p0, %p2925_p13 }
0x1603   :  { %2933 = shalt.err (!%p2930_p1)
}
0x1604   :  { %2268 = dma.vmem_to_hbm [thread:$0]  %s2266_s2, 128, %s3550_s13, [#allocation8]   ;;  %v2339_v50 = vld [vmem:[%s3546_s9] ss:$0 sm:$0xff] }
0x16b4   :  { %v2650_v51 = vpop.f32.mrb[20].mxu0 }
0x16b5   :  { %v2234_v52 = vadd.f32 %v2650_v51, %v2339_v50  ;;  %v2187_v27 = vpop.f32.mrb[21].mxu0 }
0x16b6   :  { %v2233_v54 = vadd.f32 %v2339_v50, %v2187_v27 }
0x16b7   :  { %2242 = vst [vmem:[%s3551_s14 + $0x8] sm:$0xff] %v2234_v52 }
0x16b8   :  { %2241 = vst [vmem:[%s3551_s14] sm:$0xff] %v2233_v54  ;;  %v2653_v55 = vpop.f32.mrb[22].mxu0 }
0x16b9   :  { %v2236_v39 = vadd.f32 %v2653_v55, %v2339_v50  ;;  %v2197_v37 = vpop.f32.mrb[23].mxu0 }
0x16ba   :  { %v2235_v56 = vadd.f32 %v2339_v50, %v2197_v37 }
0x16bb   :  { %2244 = vst [vmem:[%s3551_s14 + $0x18] sm:$0xff] %v2236_v39 }
0x16bc   :  { %2243 = vst [vmem:[%s3551_s14 + $0x10] sm:$0xff] %v2235_v56  ;;  %v2656_v57 = vpop.f32.mrb[24].mxu0 }
0x16bd   :  { %v2238_v58 = vadd.f32 %v2656_v57, %v2339_v50  ;;  %v2207_v41 = vpop.f32.mrb[25].mxu0 }
0x16be   :  { %v2237_v59 = vadd.f32 %v2339_v50, %v2207_v41 }
0x16bf   :  { %2246 = vst [vmem:[%s3551_s14 + $0x28] sm:$0xff] %v2238_v58 }
0x16c0   :  { %2245 = vst [vmem:[%s3551_s14 + $0x20] sm:$0xff] %v2237_v59  ;;  %v2659_v20 = vpop.f32.mrb[26].mxu0 }
0x16c1   :  { %v2240_v60 = vadd.f32 %v2659_v20, %v2339_v50  ;;  %v2217_v35 = vpop.f32.mrb[27].mxu0 }
0x16c2   :  { %v2239_v49 = vadd.f32 %v2339_v50, %v2217_v35 }
0x16c3   :  { %2248 = vst [vmem:[%s3551_s14 + $0x38] sm:$0xff] %v2240_v60 }
0x16c4   :  { %2247 = vst [vmem:[%s3551_s14 + $0x30] sm:$0xff] %v2239_v49 }
0x16c5   :  { %2934 = dma.done.wait [#allocation6], 128  }
0x16c6   :  { %2935 = vsyncadd [#allocation6], 4294967168 }
0x16c7   :  { %2936 = dma.done.wait [#allocation8], 128  }
0x16c8   :  { %2937 = vsyncadd [#allocation8], 4294967168 }
0x16c9   :  { %2279 = vsyncpa [#allocation6], 1 }
0x16ca   :  { %2280 = vsyncpa [#allocation8], 1 }

</bundles_post_ra>
